<compile_context>
chip_gen: v7x
topology: tpu7x:2x2x1
jax: 0.10.0
libtpu: 0.0.40
codegen_flags: <defaults>
</compile_context>

<pallas_src>
import functools

import jax
import jax.numpy as jnp
import numpy as np
from jax.experimental import pallas as pl
from jax.experimental.pallas import tpu as pltpu


def _clstm_kernel(p_ref, w_ref, b_ref, c_ref, out_ref, *, GR):
    # p_ref   : (TM, KP)     bf16 im2col patches, rows = flattened (n, y, x),
    #                        lanes = (dy, dx, cin) taps, zero-padded to KP
    # w_ref   : (KP, 4*GR)   bf16 conv weight, rows in the same (dy, dx, cin) order
    # b_ref   : (1, 4*GR)    f32 conv bias
    # c_ref   : (TM, GR)     f32 previous cell state (same row flattening)
    # out_ref : (TM, 2*GR)   packed [next_h | next_c]
    acc = jnp.dot(p_ref[...], w_ref[...],
                  preferred_element_type=jnp.float32)          # (TM, 4*GR) f32
    acc = acc + b_ref[...]

    # One full-width EUP pass for all four gates:
    #   lanes [0, 3*GR)   -> sigmoid(x)          (i, f, o gates)
    #   lanes [3*GR, 4*GR)-> tanh(x) = 2*sigmoid(2x) - 1   (g gate)
    lane = jax.lax.broadcasted_iota(jnp.int32, acc.shape, 1)
    scale = jnp.where(lane < 3 * GR, jnp.float32(1.0), jnp.float32(2.0))
    act = scale * jax.nn.sigmoid(scale * acc) - (scale - 1.0)

    # torch.split(A, growthrate, dim=1) order: i, f, o, g
    i = act[:, 0 * GR:1 * GR]
    f = act[:, 1 * GR:2 * GR]
    o = act[:, 2 * GR:3 * GR]
    g = act[:, 3 * GR:4 * GR]

    c_prev = c_ref[...].astype(jnp.float32)
    next_c = f * c_prev + i * g
    next_h = o * jnp.tanh(next_c)

    # Single lane-packed store (64 lanes) instead of two 32-lane masked stores.
    out_ref[...] = jnp.concatenate([next_h, next_c],
                                   axis=-1).astype(out_ref.dtype)


@functools.partial(jax.jit, static_argnames=("filter_size", "tile_m"))
def clstm_cell_forward(x, h, c, weight, bias, *, filter_size, tile_m=256):
    """x: (N, Cin, H, W); h, c: (N, GR, H, W); weight: (4*GR, Cin+GR, K, K);
    bias: (4*GR,).  Returns (next_h, next_c) in NCHW, matching the PyTorch module."""
    N, Cin, H, W = x.shape
    GR = h.shape[1]
    K = filter_size
    P = (K - 1) // 2
    C = Cin + GR
    KKC = K * K * C
    KP = ((KKC + 127) // 128) * 128            # lane-pad contraction dim (324 -> 384)
    M = N * H * W
    TM = min(tile_m, max(8, M))
    TM = (TM + 7) // 8 * 8                     # sublane-aligned row tile
    M_pad = ((M + TM - 1) // TM) * TM

    # ---- wrapper glue (cheap XLA ops): layout, concat, pad, im2col, bf16 ----
    x_nhwc = jnp.transpose(x, (0, 2, 3, 1))
    h_nhwc = jnp.transpose(h, (0, 2, 3, 1))
    comb = jnp.concatenate([x_nhwc, h_nhwc], axis=-1)                 # (N,H,W,C)
    comb = jnp.pad(comb, ((0, 0), (P, P), (P, P), (0, 0)))
    taps = [comb[:, dy:dy + H, dx:dx + W, :]
            for dy in range(K) for dx in range(K)]                    # (dy,dx) major
    patches = jnp.concatenate(taps, axis=-1).reshape(M, KKC)
    patches = jnp.pad(patches, ((0, M_pad - M), (0, KP - KKC))).astype(jnp.bfloat16)

    # OIHW -> (dy, dx, cin, o) -> (K*K*C, 4*GR), matching the patch lane order.
    w2d = jnp.transpose(weight, (2, 3, 1, 0)).reshape(KKC, 4 * GR)
    w2d = jnp.pad(w2d, ((0, KP - KKC), (0, 0))).astype(jnp.bfloat16)
    b2d = bias.reshape(1, 4 * GR).astype(jnp.float32)

    c_flat = jnp.transpose(c, (0, 2, 3, 1)).reshape(M, GR).astype(jnp.float32)
    c_flat = jnp.pad(c_flat, ((0, M_pad - M), (0, 0)))

    kern = functools.partial(_clstm_kernel, GR=GR)
    out = pl.pallas_call(
        kern,
        out_shape=jax.ShapeDtypeStruct((M_pad, 2 * GR), x.dtype),
        grid_spec=pltpu.PrefetchScalarGridSpec(
            num_scalar_prefetch=0,
            grid=(M_pad // TM,),
            in_specs=[
                pl.BlockSpec((TM, KP), lambda m: (m, 0)),          # patches
                pl.BlockSpec((KP, 4 * GR), lambda m: (0, 0)),      # weight (resident)
                pl.BlockSpec((1, 4 * GR), lambda m: (0, 0)),       # bias
                pl.BlockSpec((TM, GR), lambda m: (m, 0)),          # prev cell state
            ],
            out_specs=pl.BlockSpec((TM, 2 * GR), lambda m: (m, 0)),
        ),
        compiler_params=pltpu.CompilerParams(
            dimension_semantics=("parallel",)),
    )(patches, w2d, b2d, c_flat)

    out = out[:M]
    next_h = jnp.transpose(out[:, :GR].reshape(N, H, W, GR), (0, 3, 1, 2))
    next_c = jnp.transpose(out[:, GR:].reshape(N, H, W, GR), (0, 3, 1, 2))
    return next_h, next_c


def _reference_forward(x, h, c, weight, bias, filter_size):
    """Pure-JAX f32 reference mirroring the PyTorch bn_function (NCHW)."""
    P = (filter_size - 1) // 2
    GR = h.shape[1]
    combined = jnp.concatenate([x, h], axis=1)
    A = jax.lax.conv_general_dilated(
        combined, weight, window_strides=(1, 1),
        padding=[(P, P), (P, P)],
        dimension_numbers=("NCHW", "OIHW", "NCHW"),
        precision=jax.lax.Precision.HIGHEST)
    A = A + bias[None, :, None, None]
    ai, af, ao, ag = (A[:, 0:GR], A[:, GR:2 * GR],
                      A[:, 2 * GR:3 * GR], A[:, 3 * GR:4 * GR])
    i = jax.nn.sigmoid(ai)
    f = jax.nn.sigmoid(af)
    o = jax.nn.sigmoid(ao)
    g = jnp.tanh(ag)
    next_c = f * c + i * g
    next_h = o * jnp.tanh(next_c)
    return next_h, next_c


if __name__ == "__main__":
    # Module hyperparameters (small, consistent with CLSTM_cell.__init__)
    input_chans = 4
    growthrate = 32          # num_features / hidden channels
    filter_size = 3
    N, H, W = 2, 16, 16

    key = jax.random.PRNGKey(0)
    kx, kh, kc, kw, kb = jax.random.split(key, 5)

    x = jax.random.normal(kx, (N, input_chans, H, W), dtype=jnp.float32)
    h0 = jax.random.normal(kh, (N, growthrate, H, W), dtype=jnp.float32)
    c0 = jax.random.normal(kc, (N, growthrate, H, W), dtype=jnp.float32)

    # Deterministic Conv2d params (PyTorch default uniform init bounds).
    cin_total = input_chans + growthrate
    fan_in = cin_total * filter_size * filter_size
    bound = 1.0 / np.sqrt(fan_in)
    weight = jax.random.uniform(
        kw, (4 * growthrate, cin_total, filter_size, filter_size),
        minval=-bound, maxval=bound, dtype=jnp.float32)
    bias = jax.random.uniform(kb, (4 * growthrate,),
                              minval=-bound, maxval=bound, dtype=jnp.float32)

    next_h, next_c = clstm_cell_forward(x, h0, c0, weight, bias,
                                        filter_size=filter_size)
    next_h = jax.block_until_ready(next_h)
    next_c = jax.block_until_ready(next_c)

    ref_h, ref_c = _reference_forward(x, h0, c0, weight, bias, filter_size)
    ref_h = jax.block_until_ready(ref_h)
    ref_c = jax.block_until_ready(ref_c)

    # Tolerance loosened vs. the f32 version because the kernel uses bf16 MXU
    # operands (f32 accumulation); errors after the sigmoid/tanh gates stay
    # well below 1e-2 for O(1)-scale states.
    np.testing.assert_allclose(np.asarray(next_h), np.asarray(ref_h),
                               rtol=3e-2, atol=3e-2)
    np.testing.assert_allclose(np.asarray(next_c), np.asarray(ref_c),
                               rtol=3e-2, atol=3e-2)

    print("KERNEL_OK")
</pallas_src>

<mosaic_0001>
module attributes {stable_mosaic.version = 11 : i64} {
  func.func @_clstm_kernel(%arg0: i32, %arg1: memref<256x384xbf16, #tpu.memory_space<vmem>>, %arg2: memref<384x128xbf16, #tpu.memory_space<vmem>>, %arg3: memref<1x128xf32, #tpu.memory_space<vmem>>, %arg4: memref<256x32xf32, #tpu.memory_space<vmem>>, %arg5: memref<256x64xf32, #tpu.memory_space<vmem>>) attributes {dimension_semantics = [#tpu.dimension_semantics<parallel>], iteration_bounds = array<i64: 2>, scalar_prefetch = 0 : i64, scratch_operands = 0 : i64, tpu.core_type = #tpu.core_type<tc>, window_params = [{transform_indices = @transform_0, window_bounds = array<i64: 256, 384>}, {pipeline_mode = #tpu.pipeline_mode<synchronous>, transform_indices = @transform_1, window_bounds = array<i64: 384, 128>}, {pipeline_mode = #tpu.pipeline_mode<synchronous>, transform_indices = @transform_2, window_bounds = array<i64: 1, 128>}, {transform_indices = @transform_3, window_bounds = array<i64: 256, 32>}, {transform_indices = @transform_4, window_bounds = array<i64: 256, 64>}]} {
    %c0 = arith.constant 0 : index
    %c0_0 = arith.constant 0 : index
    %0 = vector.load %arg1[%c0, %c0_0] : memref<256x384xbf16, #tpu.memory_space<vmem>>, vector<256x384xbf16>
    %c0_1 = arith.constant 0 : index
    %c0_2 = arith.constant 0 : index
    %1 = vector.load %arg2[%c0_1, %c0_2] : memref<384x128xbf16, #tpu.memory_space<vmem>>, vector<384x128xbf16>
    %cst = arith.constant dense<0.000000e+00> : vector<256x128xf32>
    %2 = tpu.matmul %0, %1, %cst {dimension_numbers = #tpu.dot_dimension_numbers<[1], [0], [0], [1], [0, 0, 1, 1], [], []>} : vector<256x384xbf16>, vector<384x128xbf16>, vector<256x128xf32> -> vector<256x128xf32>
    %c0_3 = arith.constant 0 : index
    %c0_4 = arith.constant 0 : index
    %3 = vector.load %arg3[%c0_3, %c0_4] : memref<1x128xf32, #tpu.memory_space<vmem>>, vector<1x128xf32>
    %4 = vector.broadcast %3 : vector<1x128xf32> to vector<256x128xf32>
    %5 = arith.addf %2, %4 : vector<256x128xf32>
    %6 = tpu.iota {dimensions = array<i32: 1>} : vector<256x128xi32>
    %c96_i32 = arith.constant 96 : i32
    %7 = vector.broadcast %c96_i32 : i32 to vector<256x128xi32>
    %8 = arith.cmpi slt, %6, %7 : vector<256x128xi32>
    %cst_5 = arith.constant 1.000000e+00 : f32
    %cst_6 = arith.constant 2.000000e+00 : f32
    %9 = vector.broadcast %cst_5 : f32 to vector<256x128xf32>
    %10 = vector.broadcast %cst_6 : f32 to vector<256x128xf32>
    %11 = arith.select %8, %9, %10 : vector<256x128xi1>, vector<256x128xf32>
    %12 = arith.mulf %11, %5 : vector<256x128xf32>
    %13 = arith.negf %12 : vector<256x128xf32>
    %14 = math.exp %13 : vector<256x128xf32>
    %cst_7 = arith.constant 1.000000e+00 : f32
    %15 = vector.broadcast %cst_7 : f32 to vector<256x128xf32>
    %16 = arith.addf %15, %14 : vector<256x128xf32>
    %17 = arith.divf %15, %16 : vector<256x128xf32>
    %18 = arith.mulf %11, %17 : vector<256x128xf32>
    %cst_8 = arith.constant 1.000000e+00 : f32
    %19 = vector.broadcast %cst_8 : f32 to vector<256x128xf32>
    %20 = arith.subf %11, %19 : vector<256x128xf32>
    %21 = arith.subf %18, %20 : vector<256x128xf32>
    %22 = vector.extract_strided_slice %21 {offsets = [0, 0], sizes = [256, 32], strides = [1, 1]} : vector<256x128xf32> to vector<256x32xf32>
    %23 = vector.extract_strided_slice %21 {offsets = [0, 32], sizes = [256, 32], strides = [1, 1]} : vector<256x128xf32> to vector<256x32xf32>
    %24 = vector.extract_strided_slice %21 {offsets = [0, 64], sizes = [256, 32], strides = [1, 1]} : vector<256x128xf32> to vector<256x32xf32>
    %25 = vector.extract_strided_slice %21 {offsets = [0, 96], sizes = [256, 32], strides = [1, 1]} : vector<256x128xf32> to vector<256x32xf32>
    %c0_9 = arith.constant 0 : index
    %c0_10 = arith.constant 0 : index
    %26 = vector.load %arg4[%c0_9, %c0_10] : memref<256x32xf32, #tpu.memory_space<vmem>>, vector<256x32xf32>
    %27 = arith.mulf %23, %26 : vector<256x32xf32>
    %28 = arith.mulf %22, %25 : vector<256x32xf32>
    %29 = arith.addf %27, %28 : vector<256x32xf32>
    %30 = math.tanh %29 : vector<256x32xf32>
    %31 = arith.mulf %24, %30 : vector<256x32xf32>
    %32 = tpu.concatenate %31, %29 in 1 : vector<256x32xf32>, vector<256x32xf32> -> vector<256x64xf32>
    %c0_11 = arith.constant 0 : index
    %c0_12 = arith.constant 0 : index
    %33 = vector.load %arg5[%c0_11, %c0_12] : memref<256x64xf32, #tpu.memory_space<vmem>>, vector<256x64xf32>
    tpu.vector_store %arg5[%c0_11, %c0_12], %32 {strides = array<i32>} : memref<256x64xf32, #tpu.memory_space<vmem>>, vector<256x64xf32>,
    return
  }
  func.func @transform_0(%arg0: i32) -> (i32, i32) {
    %c0_i32 = arith.constant 0 : i32
    %c0_i32_0 = arith.constant 0 : i32
    return %arg0, %c0_i32 : i32, i32
  }
  func.func @transform_1(%arg0: i32) -> (i32, i32) {
    %c0_i32 = arith.constant 0 : i32
    %c0_i32_0 = arith.constant 0 : i32
    %c0_i32_1 = arith.constant 0 : i32
    return %c0_i32, %c0_i32_0 : i32, i32
  }
  func.func @transform_2(%arg0: i32) -> (i32, i32) {
    %c0_i32 = arith.constant 0 : i32
    %c0_i32_0 = arith.constant 0 : i32
    %c0_i32_1 = arith.constant 0 : i32
    return %c0_i32, %c0_i32_0 : i32, i32
  }
  func.func @transform_3(%arg0: i32) -> (i32, i32) {
    %c0_i32 = arith.constant 0 : i32
    %c0_i32_0 = arith.constant 0 : i32
    return %arg0, %c0_i32 : i32, i32
  }
  func.func @transform_4(%arg0: i32) -> (i32, i32) {
    %c0_i32 = arith.constant 0 : i32
    %c0_i32_0 = arith.constant 0 : i32
    return %arg0, %c0_i32 : i32, i32
  }
}

</mosaic_0001>

<bundles_post_ra>
// kernel: clstm_cell_forward.1
= control target key start
LH: loop header
LB: loop body
LE: loop exit
PB: predicated region body
PF: predicated region fallthrough
CT: control target
= control target key end

     0   :  { %s2974_s15 = smov 0   ;;  %s4012_s0 = inlined_call_operand.vmem [shape: bf16[512,384], index: 0, kind: input, shape index: {}]   ;;  %s4013_s1 = inlined_call_operand.vmem [shape: bf16[384,128], index: 1, kind: input, shape index: {}]   ;;  %s4014_s2 = inlined_call_operand.vmem [shape: f32[1,128], index: 2, kind: input, shape index: {}]   ;;  %s4015_s3 = inlined_call_operand.vmem [shape: f32[512,32], index: 3, kind: input, shape index: {}]   ;;  %s4016_s4 = inlined_call_operand.vmem [shape: f32[512,64], index: 4, kind: output, shape index: {}]  }
   0x1 LB: > { %s2327_s16 = sadd.s32 4294967295, %s2944_s15   ;;  %p2331_p0 = scmp.ge.s32.totalorder %s2944_s15, 1  ;;  %s2944_s15 = sphi %s2974_s15, %s14_s15  }
   0x2   : > { %p175_p1 = scmp.lt.s32.totalorder %s2944_s15, 3 }
   0x4   : > { %p176_p2 = pnand %p2331_p0, %p175_p1 }
   0x6   : > { %179 = sbr.rel (%p176_p2) target bundleno = 899 (0x383), region = 36 }
   0xd   : > { %v2658_v0 = vld [vmem:[%s4013_s1 + $0x40] sm:$0xff]   ;;  %s2332_s19 = sshll.u32 %s2327_s16, 5  ;;  %v2660_v2 = vld [vmem:[%s4013_s1 + $0x48] sm:$0xff]   ;;  %v2662_v4 = vld [vmem:[%s4013_s1 + $0x50] sm:$0xff]   ;;  %s2946_s27 = smov 32   ;;  %vm2193_vm1 = vcmask 261120  }
   0xe   : > { %v2659_v1 = vld [vmem:[%s4013_s1] sm:$0xff]   ;;  %2446 = vmatprep.subr.bf16.mxu0 %v2658_v0  ;;  %2630 = vmatprep.subr.bf16.mxu1 %v2658_v0  ;;  %p208_p3 = scmp.lt.s32.totalorder %s2332_s19, 63  ;;  %v2661_v3 = vld [vmem:[%s4013_s1 + $0x8] sm:$0xff]   ;;  %v2663_v5 = vld [vmem:[%s4013_s1 + $0x10] sm:$0xff]   ;;  %s2948_s29 = smov 64   ;;  %vm2226_vm2 = vcmask 523264  }
   0xf   : > { %2447 = vmatpush3.bf16.msra.mxu0 %v2659_v1  ;;  %2638 = vmatpush3.bf16.msra.mxu1 %v2659_v1  ;;  %v2664_v6 = vld [vmem:[%s4013_s1 + $0x58] sm:$0xff]   ;;  %v2666_v8 = vld [vmem:[%s4013_s1 + $0x60] sm:$0xff]   ;;  %v2668_v10 = vld [vmem:[%s4013_s1 + $0x68] sm:$0xff]  }
  0x10   : > { %2448 = vmatprep.subr.bf16.mxu0 %v2660_v2  ;;  %2631 = vmatprep.subr.bf16.mxu1 %v2660_v2  ;;  %s4078_s19 = smov (!%p208_p3, %s2332_s19), 63  ;;  %v2665_v7 = vld [vmem:[%s4013_s1 + $0x18] sm:$0xff]   ;;  %v2667_v9 = vld [vmem:[%s4013_s1 + $0x20] sm:$0xff]   ;;  %v2669_v13 = vld [vmem:[%s4013_s1 + $0x28] sm:$0xff]  }
  0x11   : > { %s2646_s6 = smul.u32 12, %s4078_s19  ;;  %v2670_v14 = vld [vmem:[%s4013_s1 + $0x70] sm:$0xff]   ;;  %v2672_v16 = vld [vmem:[%s4013_s1 + $0x78] sm:$0xff]   ;;  %v2680_v18 = vld [vmem:[%s4013_s1 + $0x80] sm:$0xff]   ;;  %s2335_s21 = sshll.u32 %s4078_s19, 3 }
  0x12   : > { %v2671_v15 = vld [vmem:[%s4013_s1 + $0x30] sm:$0xff]   ;;  %v2673_v17 = vld [vmem:[%s4013_s1 + $0x38] sm:$0xff]   ;;  %v2681_v22 = vld [vmem:[%s4013_s1 + $0x88] sm:$0xff]   ;;  %s3086_s26 = scalar_lea.vmem %s4015_s3, %s2335_s21 }
  0x13   : > { %2449 = vmatpush3.bf16.msra.mxu0 %v2661_v3  ;;  %2639 = vmatpush3.bf16.msra.mxu1 %v2661_v3  ;;  %s3015_s13 = scalar_lea.vmem %s4012_s0, %s2646_s6  ;;  %v2688_v25 = vld [vmem:[%s4013_s1 + $0x90] sm:$0xff]   ;;  %v2689_v27 = vld [vmem:[%s4013_s1 + $0x98] sm:$0xff]   ;;  %v2696_v30 = vld [vmem:[%s4013_s1 + $0xa0] sm:$0xff]   ;;  %s3879_s6 = scalar_lea.vmem %s4016_s4, %s2335_s21 }
  0x14   : > { %2450 = vmatprep.subr.bf16.mxu0 %v2662_v4  ;;  %2632 = vmatprep.subr.bf16.mxu1 %v2662_v4  ;;  %v2676_v11 = vld [vmem:[%s3015_s13 + $0x4] ss:$12 sps:$4 sm:$0xff]   ;;  %v2674_v19 = vld [vmem:[%s3015_s13] ss:$12 sps:$4 sm:$0xff]   ;;  %v2682_v21 = vld [vmem:[%s3015_s13 + $0x1c] ss:$12 sps:$4 sm:$0xff]  }
  0x15   : > { %v2679_v12 = vld [vmem:[%s3015_s13 + $0x124] ss:$12 sps:$4 sm:$0xff]   ;;  %778 = vmatprep.mubr.bf16.mxu0 %v2676_v11  ;;  %v2677_v20 = vld [vmem:[%s3015_s13 + $0x120] ss:$12 sps:$4 sm:$0xff]   ;;  %v2684_v23 = vld [vmem:[%s3015_s13 + $0x13c] ss:$12 sps:$4 sm:$0xff]  }
  0x16   : > { %874 = vmatprep.mubr.bf16.mxu1 %v2679_v12  ;;  %v2686_v24 = vld [vmem:[%s3015_s13 + $0x18] ss:$12 sps:$4 sm:$0xff]   ;;  %v2690_v28 = vld [vmem:[%s3015_s13 + $0x34] ss:$12 sps:$4 sm:$0xff]   ;;  %v2694_v31 = vld [vmem:[%s3015_s13 + $0x30] ss:$12 sps:$4 sm:$0xff]  }
  0x17   : > { %2451 = vmatpush3.bf16.msra.mxu0 %v2663_v5  ;;  %2640 = vmatpush3.bf16.msra.mxu1 %v2663_v5  ;;  %v2687_v26 = vld [vmem:[%s3015_s13 + $0x138] ss:$12 sps:$4 sm:$0xff]   ;;  %v2692_v29 = vld [vmem:[%s3015_s13 + $0x154] ss:$12 sps:$4 sm:$0xff]   ;;  %v2695_v32 = vld [vmem:[%s3015_s13 + $0x150] ss:$12 sps:$4 sm:$0xff]  }
  0x18   : > { %2452 = vmatprep.subr.bf16.mxu0 %v2664_v6  ;;  %2633 = vmatprep.subr.bf16.mxu1 %v2664_v6  ;;  %v2697_v33 = vld [vmem:[%s4013_s1 + $0xa8] sm:$0xff]   ;;  %v2704_v36 = vld [vmem:[%s4013_s1 + $0xb0] sm:$0xff]   ;;  %v2705_v40 = vld [vmem:[%s4013_s1 + $0xb8] sm:$0xff]  }
  0x19   : > { %v2698_v34 = vld [vmem:[%s3015_s13 + $0x4c] ss:$12 sps:$4 sm:$0xff]   ;;  %v2702_v37 = vld [vmem:[%s3015_s13 + $0x48] ss:$12 sps:$4 sm:$0xff]   ;;  %v2706_v39 = vld [vmem:[%s3015_s13 + $0x64] ss:$12 sps:$4 sm:$0xff]  }
  0x1a   : > { %v2700_v35 = vld [vmem:[%s3015_s13 + $0x16c] ss:$12 sps:$4 sm:$0xff]   ;;  %v2703_v38 = vld [vmem:[%s3015_s13 + $0x168] ss:$12 sps:$4 sm:$0xff]   ;;  %v1361_v42 = vld [vmem:[%s3086_s26] sm:$0xff] }
  0x1b   : > { %2453 = vmatpush3.bf16.msra.mxu0 %v2665_v7  ;;  %2641 = vmatpush3.bf16.msra.mxu1 %v2665_v7  ;;  %v2708_v41 = vld [vmem:[%s3015_s13 + $0x8] ss:$12 sps:$4 sm:$0xff]   ;;  %v2709_v44 = vld [vmem:[%s3015_s13 + $0x60] ss:$12 sps:$4 sm:$0xff]   ;;  %v2713_v47 = vld [vmem:[%s3015_s13 + $0x38] ss:$12 sps:$4 sm:$0xff]  }
  0x1c   : > { %2454 = vmatprep.subr.bf16.mxu0 %v2666_v8  ;;  %2634 = vmatprep.subr.bf16.mxu1 %v2666_v8  ;;  %v1363_v43 = vld [vmem:[%s3086_s26 + $0x10] sm:$0xff]  ;;  %v2710_v45 = vld [vmem:[%s3015_s13 + $0x20] ss:$12 sps:$4 sm:$0xff]   ;;  %v2711_v46 = vld [vmem:[%s3015_s13 + $0x7c] ss:$12 sps:$4 sm:$0xff]  }
  0x1d   : > { %1425 = vrot.lane.b32.xlu0 %v1361_v42, %s2946_s27  ;;  %1429 = vrot.lane.b32.xlu1 %v1363_v43, %s2946_s27  ;;  %v1362_v48 = vld [vmem:[%s3086_s26 + $0x8] sm:$0xff]  ;;  %v1364_v49 = vld [vmem:[%s3086_s26 + $0x18] sm:$0xff] }
  0x1e   : > { %v1365_v50 = vld [vmem:[%s3086_s26 + $0x20] sm:$0xff]  ;;  %v1366_v51 = vld [vmem:[%s3086_s26 + $0x28] sm:$0xff]  ;;  %v2715_v53 = vld [vmem:[%s3015_s13 + $0x50] ss:$12 sps:$4 sm:$0xff]  }
  0x1f   : > { %2455 = vmatpush3.bf16.msra.mxu0 %v2667_v9  ;;  %2642 = vmatpush3.bf16.msra.mxu1 %v2667_v9  ;;  %v2714_v52 = vld [vmem:[%s3015_s13 + $0x78] ss:$12 sps:$4 sm:$0xff]   ;;  %v2716_v54 = vld [vmem:[%s3015_s13 + $0x94] ss:$12 sps:$4 sm:$0xff]   ;;  %v1370_v59 = vld [vmem:[%s3086_s26 + $0x48] sm:$0xff] }
  0x20   : > { %2456 = vmatprep.subr.bf16.mxu0 %v2668_v10  ;;  %2635 = vmatprep.subr.bf16.mxu1 %v2668_v10  ;;  %v2718_v55 = vld [vmem:[%s3015_s13 + $0x68] ss:$12 sps:$4 sm:$0xff]   ;;  %v1368_v57 = vld [vmem:[%s3086_s26 + $0x38] sm:$0xff]  ;;  %v1369_v58 = vld [vmem:[%s3086_s26 + $0x40] sm:$0xff] }
  0x21   : > { %1427 = vrot.lane.b32.xlu0 %v1362_v48, %s2946_s27  ;;  %1431 = vrot.lane.b32.xlu1 %v1364_v49, %s2946_s27  ;;  %v1367_v56 = vld [vmem:[%s3086_s26 + $0x30] sm:$0xff]  ;;  %v2720_v61 = vld [vmem:[%s3015_s13 + $0x80] ss:$12 sps:$4 sm:$0xff]  }
  0x22   : > { %v2719_v60 = vld [vmem:[%s3015_s13 + $0x90] ss:$12 sps:$4 sm:$0xff]   ;;  %v2721_v62 = vld [vmem:[%s3015_s13 + $0xac] ss:$12 sps:$4 sm:$0xff]   ;;  %v1373_v2 = vld [vmem:[%s3086_s26 + $0x60] sm:$0xff] }
  0x23   : > { %2457 = vmatpush3.bf16.msra.mxu0 %v2669_v13  ;;  %2643 = vmatpush3.bf16.msra.mxu1 %v2669_v13  ;;  %v2723_v63 = vld [vmem:[%s3015_s13 + $0x98] ss:$12 sps:$4 sm:$0xff]   ;;  %v1371_v0 = vld [vmem:[%s3086_s26 + $0x50] sm:$0xff]  ;;  %v1374_v3 = vld [vmem:[%s3086_s26 + $0x68] sm:$0xff] }
  0x24   : > { %2458 = vmatprep.subr.bf16.mxu0 %v2670_v14  ;;  %2636 = vmatprep.subr.bf16.mxu1 %v2670_v14  ;;  %v1372_v1 = vld [vmem:[%s3086_s26 + $0x58] sm:$0xff]  ;;  %v2724_v4 = vld [vmem:[%s3015_s13 + $0xa8] ss:$12 sps:$4 sm:$0xff]   ;;  %v2726_v6 = vld [vmem:[%s3015_s13 + $0xc4] ss:$12 sps:$4 sm:$0xff]  }
  0x25   : > { %1433 = vrot.lane.b32.xlu0 %v1365_v50, %s2946_s27  ;;  %1435 = vrot.lane.b32.xlu1 %v1366_v51, %s2946_s27  ;;  %v2725_v5 = vld [vmem:[%s3015_s13 + $0xb0] ss:$12 sps:$4 sm:$0xff]   ;;  %v2728_v7 = vld [vmem:[%s3015_s13 + $0xc8] ss:$12 sps:$4 sm:$0xff]  }
  0x26   : > { %v1375_v8 = vld [vmem:[%s3086_s26 + $0x70] sm:$0xff]  ;;  %v1376_v9 = vld [vmem:[%s3086_s26 + $0x78] sm:$0xff]  ;;  %v1377_v10 = vld [vmem:[%s3086_s26 + $0x80] sm:$0xff] }
  0x27   : > { %2459 = vmatpush3.bf16.msra.mxu0 %v2671_v15  ;;  %2644 = vmatpush3.bf16.msra.mxu1 %v2671_v15  ;;  %v1378_v11 = vld [vmem:[%s3086_s26 + $0x88] sm:$0xff]  ;;  %v2733_v15 = vld [vmem:[%s3015_s13 + $0xf8] ss:$12 sps:$4 sm:$0xff]  }
  0x28   : > { %2460 = vmatprep.subr.bf16.mxu0 %v2672_v16  ;;  %2637 = vmatprep.subr.bf16.mxu1 %v2672_v16  ;;  %v2729_v12 = vld [vmem:[%s3015_s13 + $0xc0] ss:$12 sps:$4 sm:$0xff]   ;;  %v2731_v14 = vld [vmem:[%s3015_s13 + $0xdc] ss:$12 sps:$4 sm:$0xff]   ;;  %v1379_v16 = vld [vmem:[%s3086_s26 + $0x90] sm:$0xff] }
  0x29   : > { %1437 = vrot.lane.b32.xlu0 %v1367_v56, %s2946_s27  ;;  %1439 = vrot.lane.b32.xlu1 %v1368_v57, %s2946_s27  ;;  %v2730_v13 = vld [vmem:[%s3015_s13 + $0xe0] ss:$12 sps:$4 sm:$0xff]  }
  0x2b   : > { %2461 = vmatpush3.bf16.msra.mxu0 %v2673_v17  ;;  %2645 = vmatpush3.bf16.msra.mxu1 %v2673_v17  ;;  %v1380_v17 = vld [vmem:[%s3086_s26 + $0x98] sm:$0xff] }
  0x2c   : > { %2582 = vmatprep.subr.bf16.mxu1 %v2680_v18 }
  0x2d   : > { %1441 = vrot.lane.b32.xlu0 %v1369_v58, %s2946_s27  ;;  %1443 = vrot.lane.b32.xlu1 %v1370_v59, %s2946_s27 }
  0x2e   : > { %779 = vmatmul.mubr.bf16.vlgmr.msra.gmra.mrb[0].mxu0 %v2674_v19  ;;  %875 = vmatmul.mubr.bf16.vlgmr.msra.gmra.mrb[0].mxu1 %v2677_v20  ;;  %v1382_v19 = vld [vmem:[%s3086_s26 + $0xa8] sm:$0xff]  ;;  %v2734_v20 = vld [vmem:[%s3015_s13 + $0xd8] ss:$12 sps:$4 sm:$0xff]  }
  0x2f   : > { %2583 = vmatpush3.bf16.msra.mxu1 %v2680_v18  ;;  %786 = vmatprep.mubr.bf16.mxu0 %v2682_v21  ;;  %v1381_v18 = vld [vmem:[%s3086_s26 + $0xa0] sm:$0xff]  ;;  %v2735_v21 = vld [vmem:[%s3015_s13 + $0x110] ss:$12 sps:$4 sm:$0xff]  }
  0x30   : > { %2584 = vmatprep.subr.bf16.mxu1 %v2681_v22  ;;  %882 = vmatprep.mubr.bf16.mxu1 %v2684_v23  ;;  %v2738_v23 = vld [vmem:[%s3015_s13 + $0x128] ss:$12 sps:$4 sm:$0xff]  }
  0x31   : > { %1445 = vrot.lane.b32.xlu0 %v1371_v0, %s2946_s27  ;;  %1447 = vrot.lane.b32.xlu1 %v1372_v1, %s2946_s27 }
  0x33   : > { %2585 = vmatpush3.bf16.msra.mxu1 %v2681_v22  ;;  %v2736_v22 = vld [vmem:[%s3015_s13 + $0xf4] ss:$12 sps:$4 sm:$0xff]  }
  0x34   : > { %2586 = vmatprep.subr.bf16.mxu1 %v2688_v25 }
  0x35   : > { %1449 = vrot.lane.b32.xlu0 %v1373_v2, %s2946_s27  ;;  %1451 = vrot.lane.b32.xlu1 %v1374_v3, %s2946_s27 }
  0x36   : > { %787 = vmatmul.mubr.bf16.gmra.mrb[4].mxu0 %v2686_v24  ;;  %883 = vmatmul.mubr.bf16.gmra.mrb[4].mxu1 %v2687_v26  ;;  %v1383_v24 = vld [vmem:[%s3086_s26 + $0xb0] sm:$0xff]  ;;  %v1385_v26 = vld [vmem:[%s3086_s26 + $0xc0] sm:$0xff] }
  0x37   : > { %2587 = vmatpush3.bf16.msra.mxu1 %v2688_v25  ;;  %794 = vmatprep.mubr.bf16.mxu0 %v2690_v28  ;;  %v1384_v25 = vld [vmem:[%s3086_s26 + $0xb8] sm:$0xff] }
  0x38   : > { %2588 = vmatprep.subr.bf16.mxu1 %v2689_v27  ;;  %890 = vmatprep.mubr.bf16.mxu1 %v2692_v29  ;;  %v2739_v28 = vld [vmem:[%s3015_s13 + $0xf0] ss:$12 sps:$4 sm:$0xff]   ;;  %v2740_v29 = vld [vmem:[%s3015_s13 + $0x140] ss:$12 sps:$4 sm:$0xff]  }
  0x39   : > { %1453 = vrot.lane.b32.xlu0 %v1375_v8, %s2946_s27  ;;  %1455 = vrot.lane.b32.xlu1 %v1376_v9, %s2946_s27 }
  0x3b   : > { %2589 = vmatpush3.bf16.msra.mxu1 %v2689_v27  ;;  %v1386_v27 = vld [vmem:[%s3086_s26 + $0xc8] sm:$0xff] }
  0x3c   : > { %2590 = vmatprep.subr.bf16.mxu1 %v2696_v30 }
  0x3d   : > { %1457 = vrot.lane.b32.xlu0 %v1377_v10, %s2946_s27  ;;  %1459 = vrot.lane.b32.xlu1 %v1378_v11, %s2946_s27 }
  0x3e   : > { %795 = vmatmul.mubr.bf16.gmra.mrb[8].mxu0 %v2694_v31  ;;  %891 = vmatmul.mubr.bf16.gmra.mrb[8].mxu1 %v2695_v32  ;;  %v2743_v31 = vld [vmem:[%s3015_s13 + $0x158] ss:$12 sps:$4 sm:$0xff]   ;;  %v1387_v32 = vld [vmem:[%s3086_s26 + $0xd0] sm:$0xff] }
  0x3f   : > { %2591 = vmatpush3.bf16.msra.mxu1 %v2696_v30  ;;  %802 = vmatprep.mubr.bf16.mxu0 %v2698_v34  ;;  %v2741_v30 = vld [vmem:[%s3015_s13 + $0x10c] ss:$12 sps:$4 sm:$0xff]   ;;  %v2745_v34 = vld [vmem:[%s3015_s13 + $0x170] ss:$12 sps:$4 sm:$0xff]  }
  0x40   : > { %2592 = vmatprep.subr.bf16.mxu1 %v2697_v33  ;;  %898 = vmatprep.mubr.bf16.mxu1 %v2700_v35  ;;  %v1388_v35 = vld [vmem:[%s3086_s26 + $0xd8] sm:$0xff] }
  0x41   : > { %1461 = vrot.lane.b32.xlu0 %v1379_v16, %s2946_s27  ;;  %1463 = vrot.lane.b32.xlu1 %v1380_v17, %s2946_s27 }
  0x43   : > { %2593 = vmatpush3.bf16.msra.mxu1 %v2697_v33  ;;  %v2744_v33 = vld [vmem:[%s3015_s13 + $0x108] ss:$12 sps:$4 sm:$0xff]  }
  0x44   : > { %2594 = vmatprep.subr.bf16.mxu1 %v2704_v36 }
  0x45   : > { %1465 = vrot.lane.b32.xlu0 %v1381_v18, %s2946_s27  ;;  %1467 = vrot.lane.b32.xlu1 %v1382_v19, %s2946_s27 }
  0x46   : > { %803 = vmatmul.mubr.bf16.gmra.mrb[12].mxu0 %v2702_v37  ;;  %899 = vmatmul.mubr.bf16.gmra.mrb[12].mxu1 %v2703_v38  ;;  %v1390_v37 = vld [vmem:[%s3086_s26 + $0xe8] sm:$0xff]  ;;  %v1391_v38 = vld [vmem:[%s3086_s26 + $0xf0] sm:$0xff] }
  0x47   : > { %2595 = vmatpush3.bf16.msra.mxu1 %v2704_v36  ;;  %810 = vmatprep.mubr.bf16.mxu0 %v2706_v39  ;;  %v1389_v36 = vld [vmem:[%s3086_s26 + $0xe0] sm:$0xff]  ;;  %v1392_v39 = vld [vmem:[%s3086_s26 + $0xf8] sm:$0xff] }
  0x48   : > { %2596 = vmatprep.subr.bf16.mxu1 %v2705_v40  ;;  %2598 = vmatprep.mubr.bf16.mxu1 %v2708_v41 }
  0x49   : > { %1469 = vrot.lane.b32.xlu0 %v1383_v24, %s2946_s27  ;;  %1471 = vrot.lane.b32.xlu1 %v1384_v25, %s2946_s27 }
  0x4b   : > { %2597 = vmatpush3.bf16.msra.mxu1 %v2705_v40 }
  0x4d   : > { %1473 = vrot.lane.b32.xlu0 %v1385_v26, %s2946_s27  ;;  %1475 = vrot.lane.b32.xlu1 %v1386_v27, %s2946_s27  ;;  %v3201_v26 = vld [vmem:[%s4014_s2] ss:$0 sm:$0xff] }
  0x4e   : > { %811 = vmatmul.mubr.bf16.gmra.mrb[16].mxu0 %v2709_v44  ;;  %2599 = vmatmul.mubr.bf16.vlgmr.msra.gmra.mrb[16].mxu1 %v2710_v45 }
  0x4f   : > { %818 = vmatprep.mubr.bf16.mxu0 %v2711_v46  ;;  %2602 = vmatprep.mubr.bf16.mxu1 %v2713_v47 }
  0x51   : > { %1477 = vrot.lane.b32.xlu0 %v1387_v32, %s2946_s27  ;;  %1479 = vrot.lane.b32.xlu1 %v1388_v35, %s2946_s27 }
  0x55   : > { %1481 = vrot.lane.b32.xlu0 %v1389_v36, %s2946_s27  ;;  %1483 = vrot.lane.b32.xlu1 %v1390_v37, %s2946_s27 }
  0x56   : > { %819 = vmatmul.mubr.bf16.gmra.mrb[20].mxu0 %v2714_v52  ;;  %2603 = vmatmul.mubr.bf16.gmra.mrb[20].mxu1 %v2715_v53 }
  0x57   : > { %826 = vmatprep.mubr.bf16.mxu0 %v2716_v54  ;;  %2606 = vmatprep.mubr.bf16.mxu1 %v2718_v55 }
  0x59   : > { %1485 = vrot.lane.b32.xlu0 %v1391_v38, %s2946_s27  ;;  %1487 = vrot.lane.b32.xlu1 %v1392_v39, %s2946_s27 }
  0x5e   : > { %827 = vmatmul.mubr.bf16.gmra.mrb[24].mxu0 %v2719_v60  ;;  %2607 = vmatmul.mubr.bf16.gmra.mrb[24].mxu1 %v2720_v61 }
  0x5f   : > { %834 = vmatprep.mubr.bf16.mxu0 %v2721_v62  ;;  %2610 = vmatprep.mubr.bf16.mxu1 %v2723_v63 }
  0x66   : > { %835 = vmatmul.mubr.bf16.gmra.mrb[28].mxu0 %v2724_v4  ;;  %2611 = vmatmul.mubr.bf16.gmra.mrb[28].mxu1 %v2725_v5 }
  0x67   : > { %842 = vmatprep.mubr.bf16.mxu0 %v2726_v6  ;;  %2614 = vmatprep.mubr.bf16.mxu1 %v2728_v7 }
  0x6e   : > { %843 = vmatmul.mubr.bf16.gmra.mrb[32].mxu0 %v2729_v12  ;;  %2615 = vmatmul.mubr.bf16.gmra.mrb[32].mxu1 %v2730_v13  ;;  %v1068_v12 = vlaneseq }
  0x6f   : > { %850 = vmatprep.mubr.bf16.mxu0 %v2731_v14  ;;  %2618 = vmatprep.mubr.bf16.mxu1 %v2733_v15 }
  0x70   : > { %v1069_v17 = vand.u32 127, %v1068_v12 }
  0x72   : > { %vm1070_vm0 = vcmp.lt.s32.totalorder %v1069_v17, 96 }
  0x76   : > { %851 = vmatmul.mubr.bf16.gmra.mrb[36].mxu0 %v2734_v20  ;;  %2619 = vmatmul.mubr.bf16.gmra.mrb[36].mxu1 %v2735_v21 }
  0x77   : > { %858 = vmatprep.mubr.bf16.mxu0 %v2736_v22  ;;  %2622 = vmatprep.mubr.bf16.mxu1 %v2738_v23 }
  0x7e   : > { %859 = vmatmul.mubr.bf16.gmra.mrb[40].mxu0 %v2739_v28  ;;  %2623 = vmatmul.mubr.bf16.gmra.mrb[40].mxu1 %v2740_v29 }
  0x7f   : > { %866 = vmatprep.mubr.bf16.mxu0 %v2741_v30  ;;  %2626 = vmatprep.mubr.bf16.mxu1 %v2743_v31  ;;  %v2947_v30 = vmov 2.0  }
  0x80   : > { %v3204_v31 = vsel %vm1070_vm0, 1.0, %v2947_v30 }
  0x86   : > { %867 = vmatmul.mubr.bf16.gmra.mrb[44].mxu0 %v2744_v33  ;;  %2627 = vmatmul.mubr.bf16.gmra.mrb[44].mxu1 %v2745_v34 }
 0x101   : > { %v2462_v40 = vpop.f32.mrb[0].mxu0  ;;  %v2534_v41 = vpop.f32.mrb[0].mxu1 }
 0x102   : > { %v2463_v42 = vpop.f32.mrb[1].mxu0  ;;  %v2535_v43 = vpop.f32.mrb[1].mxu1 }
 0x103   : > { %v2464_v44 = vadd.f32 %v2463_v42, %v2462_v40  ;;  %v3182_v45 = vadd.f32 %v2535_v43, %v2534_v41  ;;  %v2465_v46 = vpop.f32.mrb[2].mxu0  ;;  %v2537_v47 = vpop.f32.mrb[2].mxu1 }
 0x104   : > { %v2466_v48 = vpop.f32.mrb[3].mxu0  ;;  %v2538_v49 = vpop.f32.mrb[3].mxu1 }
 0x105   : > { %v2467_v50 = vadd.f32 %v2466_v48, %v2465_v46  ;;  %v3184_v51 = vadd.f32 %v2538_v49, %v2537_v47  ;;  %v781_v32 = vadd.f32 %v2464_v44, %v3201_v26 }
 0x107   : > { %v784_v41 = vadd.f32 %v2467_v50, %v3201_v26 }
 0x109   : > { %v2468_v52 = vpop.f32.mrb[4].mxu0  ;;  %v2540_v53 = vpop.f32.mrb[4].mxu1 }
 0x10a   : > { %v2469_v54 = vpop.f32.mrb[5].mxu0  ;;  %v2541_v55 = vpop.f32.mrb[5].mxu1 }
 0x10b   : > { %v2470_v56 = vadd.f32 %v2469_v54, %v2468_v52  ;;  %v3186_v57 = vadd.f32 %v2541_v55, %v2540_v53  ;;  %v2471_v58 = vpop.f32.mrb[6].mxu0  ;;  %v2543_v59 = vpop.f32.mrb[6].mxu1 }
 0x10c   : > { %v2472_v60 = vpop.f32.mrb[7].mxu0  ;;  %v2544_v61 = vpop.f32.mrb[7].mxu1 }
 0x10d   : > { %v2473_v62 = vadd.f32 %v2472_v60, %v2471_v58  ;;  %v3188_v63 = vadd.f32 %v2544_v61, %v2543_v59  ;;  %v789_v27 = vadd.f32 %v2470_v56, %v3201_v26 }
 0x10f   : > { %v792_v36 = vadd.f32 %v2473_v62, %v3201_v26 }
 0x111   : > { %v2474_v0 = vpop.f32.mrb[8].mxu0  ;;  %v2546_v1 = vpop.f32.mrb[8].mxu1 }
 0x112   : > { %v2475_v2 = vpop.f32.mrb[9].mxu0  ;;  %v2547_v3 = vpop.f32.mrb[9].mxu1 }
 0x113   : > { %v2476_v4 = vadd.f32 %v2475_v2, %v2474_v0  ;;  %v3190_v5 = vadd.f32 %v2547_v3, %v2546_v1  ;;  %v2477_v6 = vpop.f32.mrb[10].mxu0  ;;  %v2549_v7 = vpop.f32.mrb[10].mxu1 }
 0x114   : > { %v2478_v8 = vpop.f32.mrb[11].mxu0  ;;  %v2550_v9 = vpop.f32.mrb[11].mxu1 }
 0x115   : > { %v2479_v10 = vadd.f32 %v2478_v8, %v2477_v6  ;;  %v3192_v11 = vadd.f32 %v2550_v9, %v2549_v7  ;;  %v797_v61 = vadd.f32 %v2476_v4, %v3201_v26 }
 0x117   : > { %v800_v9 = vadd.f32 %v2479_v10, %v3201_v26 }
 0x119   : > { %v2480_v13 = vpop.f32.mrb[12].mxu0  ;;  %v2552_v14 = vpop.f32.mrb[12].mxu1 }
 0x11a   : > { %v2481_v15 = vpop.f32.mrb[13].mxu0  ;;  %v2553_v16 = vpop.f32.mrb[13].mxu1 }
 0x11b   : > { %v2482_v18 = vadd.f32 %v2481_v15, %v2480_v13  ;;  %v3194_v19 = vadd.f32 %v2553_v16, %v2552_v14  ;;  %v2483_v20 = vpop.f32.mrb[14].mxu0  ;;  %v2555_v21 = vpop.f32.mrb[14].mxu1 }
 0x11c   : > { %v2484_v22 = vpop.f32.mrb[15].mxu0  ;;  %v2556_v23 = vpop.f32.mrb[15].mxu1 }
 0x11d   : > { %v2485_v24 = vadd.f32 %v2484_v22, %v2483_v20  ;;  %v3196_v25 = vadd.f32 %v2556_v23, %v2555_v21  ;;  %v805_v58 = vadd.f32 %v2482_v18, %v3201_v26 }
 0x11f   : > { %v808_v2 = vadd.f32 %v2485_v24, %v3201_v26 }
 0x121   : > { %v2486_v28 = vpop.f32.mrb[16].mxu0  ;;  %v2600_v29 = vpop.f32.mrb[16].mxu1 }
 0x122   : > { %v950_v33 = vadd.f32 %v2600_v29, %v789_v27  ;;  %v2487_v34 = vpop.f32.mrb[17].mxu0  ;;  %v941_v35 = vpop.f32.mrb[17].mxu1 }
 0x123   : > { %v2488_v37 = vadd.f32 %v2487_v34, %v2486_v28  ;;  %v942_v38 = vadd.f32 %v941_v35, %v781_v32  ;;  %v2489_v39 = vpop.f32.mrb[18].mxu0  ;;  %v2601_v40 = vpop.f32.mrb[18].mxu1 }
 0x124   : > { %v1074_v42 = vmul.f32 %v3204_v31, %v950_v33  ;;  %v953_v43 = vadd.f32 %v2601_v40, %v792_v36  ;;  %v2490_v46 = vpop.f32.mrb[19].mxu0  ;;  %v944_v47 = vpop.f32.mrb[19].mxu1 }
 0x125   : > { %v1072_v48 = vmul.f32 %v3204_v31, %v942_v38  ;;  %v2491_v49 = vadd.f32 %v2490_v46, %v2489_v39  ;;  %v945_v44 = vadd.f32 %v944_v47, %v784_v41  ;;  %v813_v29 = vadd.f32 %v2488_v37, %v3201_v26 }
 0x126   : > { %v2413_v52 = vmul.f32 -1.442695, %v1074_v42  ;;  %v1075_v53 = vmul.f32 %v3204_v31, %v953_v43 }
 0x127   : > { %v2411_v54 = vmul.f32 -1.442695, %v1072_v48  ;;  %v1073_v55 = vmul.f32 %v3204_v31, %v945_v44  ;;  %v816_v44 = vadd.f32 %v2491_v49, %v3201_v26 }
 0x128   : > { %2746 = vpow2.f32 %v2413_v52  ;;  %v2414_v56 = vmul.f32 -1.442695, %v1075_v53 }
 0x129   : > { %2748 = vpow2.f32 %v2411_v54  ;;  %v2412_v50 = vmul.f32 -1.442695, %v1073_v55  ;;  %v2492_v59 = vpop.f32.mrb[20].mxu0  ;;  %v2604_v60 = vpop.f32.mrb[20].mxu1 }
 0x12a   : > { %2750 = vpow2.f32 %v2414_v56  ;;  %v966_v62 = vadd.f32 %v2604_v60, %v805_v58  ;;  %v2493_v0 = vpop.f32.mrb[21].mxu0  ;;  %v957_v1 = vpop.f32.mrb[21].mxu1 }
 0x12b   : > { %2752 = vpow2.f32 %v2412_v50  ;;  %v2494_v3 = vadd.f32 %v2493_v0, %v2492_v59  ;;  %v958_v6 = vadd.f32 %v957_v1, %v797_v61  ;;  %v2495_v7 = vpop.f32.mrb[22].mxu0  ;;  %v2605_v8 = vpop.f32.mrb[22].mxu1 }
 0x12c   : > { %v1078_v12 = vmul.f32 %v3204_v31, %v966_v62  ;;  %v969_v13 = vadd.f32 %v2605_v8, %v808_v2  ;;  %v2496_v14 = vpop.f32.mrb[23].mxu0  ;;  %v960_v15 = vpop.f32.mrb[23].mxu1 }
 0x12d   : > { %v1076_v4 = vmul.f32 %v3204_v31, %v958_v6  ;;  %v2497_v16 = vadd.f32 %v2496_v14, %v2495_v7  ;;  %v961_v17 = vadd.f32 %v960_v15, %v800_v9  ;;  %v821_v24 = vadd.f32 %v2494_v3, %v3201_v26 }
 0x12e   : > { %v2417_v18 = vmul.f32 -1.442695, %v1078_v12  ;;  %v1079_v20 = vmul.f32 %v3204_v31, %v969_v13  ;;  %v3231_v15 = vadd.f32 -1.0, %v3204_v31 }
 0x12f   : > { %v2415_v21 = vmul.f32 -1.442695, %v1076_v4  ;;  %v1077_v22 = vmul.f32 %v3204_v31, %v961_v17  ;;  %v824_v35 = vadd.f32 %v2497_v16, %v3201_v26 }
 0x130   : > { %2754 = vpow2.f32 %v2417_v18  ;;  %v2418_v23 = vmul.f32 -1.442695, %v1079_v20 }
 0x131   : > { %2756 = vpow2.f32 %v2415_v21  ;;  %v2416_v10 = vmul.f32 -1.442695, %v1077_v22  ;;  %v2498_v27 = vpop.f32.mrb[24].mxu0  ;;  %v2608_v28 = vpop.f32.mrb[24].mxu1 }
 0x132   : > { %v2747_v30 = vpop.eup %2746  ;;  %2758 = vpow2.f32 %v2418_v23  ;;  %v982_v32 = vadd.f32 %v2608_v28, %v821_v24  ;;  %v2499_v33 = vpop.f32.mrb[25].mxu0 }
 0x133   : > { %v973_v34 = vpop.f32.mrb[25].mxu1  ;;  %v2749_v36 = vpop.eup %2748  ;;  %v1202_v38 = vadd.f32 1.0, %v2747_v30  ;;  %2760 = vpow2.f32 %v2416_v10  ;;  %v2500_v39 = vadd.f32 %v2499_v33, %v2498_v27 }
 0x134   : > { %v974_v40 = vadd.f32 %v973_v34, %v813_v29  ;;  %v2501_v41 = vpop.f32.mrb[26].mxu0  ;;  %v2609_v42 = vpop.f32.mrb[26].mxu1  ;;  %v1200_v46 = vadd.f32 1.0, %v2749_v36  ;;  %v1082_v47 = vmul.f32 %v3204_v31, %v982_v32 }
 0x135   : > { %v2751_v43 = vpop.eup %2750  ;;  %v985_v48 = vadd.f32 %v2609_v42, %v824_v35  ;;  %v2502_v37 = vpop.f32.mrb[27].mxu0  ;;  %2762 = vrcp.f32 %v1202_v38  ;;  %v829_v6 = vadd.f32 %v2500_v39, %v3201_v26 }
 0x136   : > { %v976_v52 = vpop.f32.mrb[27].mxu1  ;;  %v2753_v53 = vpop.eup %2752  ;;  %v1203_v54 = vadd.f32 1.0, %v2751_v43  ;;  %v1080_v55 = vmul.f32 %v3204_v31, %v974_v40  ;;  %v2503_v56 = vadd.f32 %v2502_v37, %v2501_v41  ;;  %2764 = vrcp.f32 %v1200_v46 }
 0x137   : > { %v1201_v58 = vadd.f32 1.0, %v2753_v53  ;;  %v2421_v50 = vmul.f32 -1.442695, %v1082_v47  ;;  %v1083_v59 = vmul.f32 %v3204_v31, %v985_v48  ;;  %v977_v61 = vadd.f32 %v976_v52, %v816_v44 }
 0x138   : > { %2766 = vrcp.f32 %v1203_v54  ;;  %v2419_v60 = vmul.f32 -1.442695, %v1080_v55  ;;  %v832_v21 = vadd.f32 %v2503_v56, %v3201_v26 }
 0x139   : > { %2768 = vrcp.f32 %v1201_v58  ;;  %v2422_v62 = vmul.f32 -1.442695, %v1083_v59  ;;  %v1081_v49 = vmul.f32 %v3204_v31, %v977_v61  ;;  %v2504_v0 = vpop.f32.mrb[28].mxu0  ;;  %v2612_v1 = vpop.f32.mrb[28].mxu1 }
 0x13a   : > { %2770 = vpow2.f32 %v2421_v50  ;;  %v2755_v2 = vpop.eup %2754  ;;  %v2505_v3 = vpop.f32.mrb[29].mxu0 }
 0x13b   : > { %2772 = vpow2.f32 %v2419_v60  ;;  %v989_v7 = vpop.f32.mrb[29].mxu1  ;;  %v2757_v8 = vpop.eup %2756  ;;  %v1206_v9 = vadd.f32 1.0, %v2755_v2  ;;  %v2506_v12 = vadd.f32 %v2505_v3, %v2504_v0  ;;  %v2420_v17 = vmul.f32 -1.442695, %v1081_v49 }
 0x13c   : > { %2774 = vpow2.f32 %v2422_v62  ;;  %v2507_v13 = vpop.f32.mrb[30].mxu0  ;;  %v2613_v14 = vpop.f32.mrb[30].mxu1  ;;  %v1204_v16 = vadd.f32 1.0, %v2757_v8  ;;  %v990_v18 = vadd.f32 %v989_v7, %v829_v6 }
 0x13d   : > { %v2759_v4 = vpop.eup %2758  ;;  %v2508_v20 = vpop.f32.mrb[31].mxu0  ;;  %2776 = vrcp.f32 %v1206_v9  ;;  %v837_v10 = vadd.f32 %v2506_v12, %v3201_v26 }
 0x13e   : > { %v992_v22 = vpop.f32.mrb[31].mxu1  ;;  %v2761_v23 = vpop.eup %2760  ;;  %v1207_v24 = vadd.f32 1.0, %v2759_v4  ;;  %v2509_v27 = vadd.f32 %v2508_v20, %v2507_v13  ;;  %2778 = vrcp.f32 %v1204_v16  ;;  %v1084_v29 = vmul.f32 %v3204_v31, %v990_v18 }
 0x13f   : > { %v1205_v28 = vadd.f32 1.0, %v2761_v23  ;;  %v993_v30 = vadd.f32 %v992_v22, %v832_v21  ;;  %v2763_v32 = vpop.eup %2762  ;;  %v998_v33 = vadd.f32 %v2612_v1, %v837_v10 }
 0x140   : > { %2780 = vrcp.f32 %v1207_v24  ;;  %v840_v34 = vadd.f32 %v2509_v27, %v3201_v26  ;;  %v2765_v35 = vpop.eup %2764  ;;  %v2423_v36 = vmul.f32 -1.442695, %v1084_v29  ;;  %v1298_v39 = vmul.f32 %v2763_v32, %v3204_v31 }
 0x141   : > { %2782 = vrcp.f32 %v1205_v28  ;;  %v1085_v38 = vmul.f32 %v3204_v31, %v993_v30  ;;  %v1086_v41 = vmul.f32 %v3204_v31, %v998_v33  ;;  %v2510_v43 = vpop.f32.mrb[32].mxu0  ;;  %v3240_v46 = vpop.f32.mrb[32].mxu1  ;;  %v1296_v37 = vmul.f32 %v2765_v35, %v3204_v31 }
 0x142   : > { %v2767_v40 = vpop.eup %2766  ;;  %2784 = vpow2.f32 %v2420_v17  ;;  %v1001_v42 = vadd.f32 %v2613_v14, %v840_v34  ;;  %v3244_v44 = vsub.f32 %v1298_v39, %v3231_v15  ;;  %v2511_v52 = vpop.f32.mrb[33].mxu0 }
 0x143   : > { %v2769_v47 = vpop.eup %2768  ;;  %2786 = vpow2.f32 %v2423_v36  ;;  %v2424_v48 = vmul.f32 -1.442695, %v1085_v38  ;;  %v1005_v53 = vpop.f32.mrb[33].mxu1  ;;  %v2425_v55 = vmul.f32 -1.442695, %v1086_v41  ;;  %v2512_v58 = vadd.f32 %v2511_v52, %v2510_v43 }
 0x144   : > { %v2771_v54 = vpop.eup %2770  ;;  %v1087_v56 = vmul.f32 %v3204_v31, %v1001_v42  ;;  %v2513_v50 = vpop.f32.mrb[34].mxu0  ;;  %v1299_v60 = vmul.f32 %v2767_v40, %v3204_v31  ;;  %1589 = vrot.lane.b32.xlu0 %v3244_v44, %s2946_s27  ;;  %v3253_v6 = vsub.f32 %v1296_v37, %v3231_v15  ;;  %v1297_v9 = vmul.f32 %v2769_v47, %v3204_v31 }
 0x145   : > { %v3247_v59 = vpop.f32.mrb[34].mxu1  ;;  %v2773_v61 = vpop.eup %2772  ;;  %v1210_v62 = vadd.f32 1.0, %v2771_v54  ;;  %2788 = vpow2.f32 %v2424_v48  ;;  %v845_v7 = vadd.f32 %v2512_v58, %v3201_v26 }
 0x146   : > { %v2514_v49 = vpop.f32.mrb[35].mxu0  ;;  %v1008_v0 = vpop.f32.mrb[35].mxu1  ;;  %v1208_v2 = vadd.f32 1.0, %v2773_v61  ;;  %2790 = vpow2.f32 %v2425_v55  ;;  %v2426_v3 = vmul.f32 -1.442695, %v1087_v56  ;;  %v3258_v13 = vsub.f32 %v1299_v60, %v3231_v15 }
 0x147   : > { %v2775_v1 = vpop.eup %2774  ;;  %2792 = vrcp.f32 %v1210_v62  ;;  %v2515_v12 = vadd.f32 %v2514_v49, %v2513_v50  ;;  %v1006_v16 = vadd.f32 %v1005_v53, %v845_v7  ;;  %v3277_v33 = vsub.f32 %v1297_v9, %v3231_v15 }
 0x148   : > { %v2777_v8 = vpop.eup %2776  ;;  %2794 = vrcp.f32 %v1208_v2  ;;  %v1211_v4 = vadd.f32 1.0, %v2775_v1  ;;  %1585 = vrot.lane.b32.xlu0 %v3253_v6, %s2946_s27  ;;  %1591 = vrot.lane.b32.xlu1 %v3258_v13, %s2946_s27  ;;  %v877_v61 = vadd.f32 %v3182_v45, %v3201_v26  ;;  %v885_v7 = vadd.f32 %v3186_v57, %v3201_v26 }
 0x149   : > { %v2779_v14 = vpop.eup %2778  ;;  %v1302_v17 = vmul.f32 %v2777_v8, %v3204_v31  ;;  %2796 = vpow2.f32 %v2426_v3  ;;  %v848_v20 = vadd.f32 %v2515_v12, %v3201_v26  ;;  %v2516_v22 = vpop.f32.mrb[36].mxu0  ;;  %v1088_v10 = vmul.f32 %v3204_v31, %v1006_v16 }
 0x14a   : > { %v2781_v18 = vpop.eup %2780  ;;  %v1300_v21 = vmul.f32 %v2779_v14, %v3204_v31  ;;  %v3267_v23 = vpop.f32.mrb[36].mxu1  ;;  %2798 = vrcp.f32 %v1211_v4 }
 0x14b   : > { %v2783_v24 = vpop.eup %2782  ;;  %v2517_v27 = vpop.f32.mrb[37].mxu0  ;;  %v3273_v29 = vsub.f32 %v1302_v17, %v3231_v15  ;;  %v1303_v30 = vmul.f32 %v2781_v18, %v3204_v31  ;;  %v1009_v34 = vadd.f32 %v1008_v0, %v848_v20  ;;  %v2427_v41 = vmul.f32 -1.442695, %v1088_v10 }
 0x14c   : > { %v3270_v28 = vpop.f32.mrb[37].mxu1  ;;  %v2785_v32 = vpop.eup %2784  ;;  %v2518_v35 = vadd.f32 %v2517_v27, %v2516_v22  ;;  %v3287_v37 = vsub.f32 %v1300_v21, %v3231_v15  ;;  %1587 = vrot.lane.b32.xlu1 %v3277_v33, %s2946_s27  ;;  %v1301_v54 = vmul.f32 %v2783_v24, %v3204_v31 }
 0x14d   : > { %v2519_v36 = vpop.f32.mrb[38].mxu0  ;;  %v3279_v38 = vpop.f32.mrb[38].mxu1  ;;  %v1209_v40 = vadd.f32 1.0, %v2785_v32  ;;  %1597 = vrot.lane.b32.xlu0 %v3273_v29, %s2946_s27  ;;  %v1089_v48 = vmul.f32 %v3204_v31, %v1009_v34  ;;  %v3292_v52 = vsub.f32 %v1303_v30, %v3231_v15 }
 0x14e   : > { %v2787_v39 = vpop.eup %2786  ;;  %v2520_v42 = vpop.f32.mrb[39].mxu0  ;;  %v853_v55 = vadd.f32 %v2518_v35, %v3201_v26  ;;  %v3310_v9 = vsub.f32 %v1301_v54, %v3231_v15 }
 0x14f   : > { %v3281_v43 = vpop.f32.mrb[39].mxu1  ;;  %v1212_v47 = vadd.f32 1.0, %v2787_v39  ;;  %v2789_v53 = vpop.eup %2788  ;;  %2800 = vrcp.f32 %v1209_v40  ;;  %v2521_v56 = vadd.f32 %v2520_v42, %v2519_v36  ;;  %v2428_v60 = vmul.f32 -1.442695, %v1089_v48 }
 0x150   : > { %v2791_v58 = vpop.eup %2790  ;;  %v1213_v50 = vadd.f32 1.0, %v2789_v53  ;;  %v1014_v0 = vadd.f32 %v3240_v46, %v853_v55  ;;  %1599 = vrot.lane.b32.xlu1 %v3292_v52, %s2946_s27  ;;  %v888_v46 = vadd.f32 %v3188_v63, %v3201_v26  ;;  %v880_v42 = vadd.f32 %v3184_v51, %v3201_v26  ;;  %v3329_v55 = vpop.permute.xlu0 %1425 }
 0x151   : > { %2802 = vrcp.f32 %v1212_v47  ;;  %v2793_v62 = vpop.eup %2792  ;;  %v1214_v49 = vadd.f32 1.0, %v2791_v58  ;;  %v856_v1 = vadd.f32 %v2521_v56, %v3201_v26  ;;  %1593 = vrot.lane.b32.xlu0 %v3287_v37, %s2946_s27  ;;  %v2522_v3 = vpop.f32.mrb[40].mxu0 }
 0x152   : > { %2804 = vpow2.f32 %v2427_v41  ;;  %v2795_v2 = vpop.eup %2794  ;;  %v2624_v45 = vpop.f32.mrb[40].mxu1  ;;  %v1306_v8 = vmul.f32 %v2793_v62, %v3204_v31  ;;  %v1090_v12 = vmul.f32 %v3204_v31, %v1014_v0 }
 0x153   : > { %2806 = vrcp.f32 %v1213_v50  ;;  %v1017_v14 = vadd.f32 %v3247_v59, %v856_v1  ;;  %v2523_v4 = vpop.f32.mrb[41].mxu0  ;;  %v1037_v16 = vpop.f32.mrb[41].mxu1  ;;  %v1046_v18 = vadd.f32 %v2624_v45, %v885_v7  ;;  %v1304_v27 = vmul.f32 %v2795_v2, %v3204_v31 }
 0x154   : > { %2808 = vrcp.f32 %v1214_v49  ;;  %v2797_v17 = vpop.eup %2796  ;;  %v2524_v57 = vadd.f32 %v2523_v4, %v2522_v3  ;;  %v1038_v20 = vadd.f32 %v1037_v16, %v877_v61  ;;  %v2525_v21 = vpop.f32.mrb[42].mxu0  ;;  %v2429_v10 = vmul.f32 -1.442695, %v1090_v12  ;;  %1595 = vrot.lane.b32.xlu1 %v3310_v9, %s2946_s27 }
 0x155   : > { %2810 = vpow2.f32 %v2428_v60  ;;  %v2625_v22 = vpop.f32.mrb[42].mxu1  ;;  %v1215_v24 = vadd.f32 1.0, %v2797_v17  ;;  %v1091_v63 = vmul.f32 %v3204_v31, %v1017_v14  ;;  %v2526_v30 = vpop.f32.mrb[43].mxu0  ;;  %v1098_v34 = vmul.f32 %v3204_v31, %v1046_v18 }
 0x156   : > { %v1040_v32 = vpop.f32.mrb[43].mxu1  ;;  %v861_v59 = vadd.f32 %v2524_v57, %v3201_v26  ;;  %v1096_v35 = vmul.f32 %v3204_v31, %v1038_v20  ;;  %v3322_v36 = vsub.f32 %v1306_v8, %v3231_v15  ;;  %v2799_v39 = vpop.eup %2798  ;;  %v1049_v41 = vadd.f32 %v2625_v22, %v888_v46 }
 0x157   : > { %2812 = vrcp.f32 %v1215_v24  ;;  %v2430_v40 = vmul.f32 -1.442695, %v1091_v63  ;;  %v2437_v47 = vmul.f32 -1.442695, %v1098_v34  ;;  %v2527_v58 = vadd.f32 %v2526_v30, %v2525_v21 }
 0x158   : > { %2814 = vpow2.f32 %v2429_v10  ;;  %v1022_v48 = vadd.f32 %v3270_v28, %v861_v59  ;;  %v2435_v53 = vmul.f32 -1.442695, %v1096_v35  ;;  %1605 = vrot.lane.b32.xlu0 %v3322_v36, %s2946_s27  ;;  %v1099_v56 = vmul.f32 %v3204_v31, %v1049_v41  ;;  %v3347_v10 = vpop.permute.xlu1 %1429 }
 0x159   : > { %v2801_v54 = vpop.eup %2800  ;;  %2816 = vpow2.f32 %v2430_v40  ;;  %v3333_v60 = vsub.f32 %v1304_v27, %v3231_v15  ;;  %v1041_v61 = vadd.f32 %v1040_v32, %v880_v42  ;;  %v2528_v28 = vpop.f32.mrb[44].mxu0  ;;  %v864_v1 = vadd.f32 %v2527_v58, %v3201_v26 }
 0x15a   : > { %2818 = vpow2.f32 %v2437_v47  ;;  %v1092_v51 = vmul.f32 %v3204_v31, %v1022_v48  ;;  %v2628_v62 = vpop.f32.mrb[44].mxu1  ;;  %v2438_v0 = vmul.f32 -1.442695, %v1099_v56  ;;  %v1307_v2 = vmul.f32 %v2799_v39, %v3204_v31  ;;  %v2529_v3 = vpop.f32.mrb[45].mxu0 }
 0x15b   : > { %v2803_v50 = vpop.eup %2802  ;;  %2820 = vpow2.f32 %v2435_v53  ;;  %v1053_v7 = vpop.f32.mrb[45].mxu1  ;;  %v1305_v46 = vmul.f32 %v2801_v54, %v3204_v31  ;;  %v1097_v14 = vmul.f32 %v3204_v31, %v1041_v61  ;;  %v1025_v18 = vadd.f32 %v3281_v43, %v864_v1 }
 0x15c   : > { %v2805_v49 = vpop.eup %2804  ;;  %v2431_v12 = vmul.f32 -1.442695, %v1092_v51  ;;  %1601 = vrot.lane.b32.xlu0 %v3333_v60, %s2946_s27  ;;  %v2531_v4 = vpop.f32.mrb[46].mxu0  ;;  %2822 = vpow2.f32 %v2438_v0  ;;  %v3344_v57 = vsub.f32 %v1307_v2, %v3231_v15  ;;  %v1308_v20 = vmul.f32 %v2803_v50, %v3204_v31 }
 0x15d   : > { %v2807_v45 = vpop.eup %2806  ;;  %v1216_v8 = vadd.f32 1.0, %v2805_v49  ;;  %v2629_v16 = vpop.f32.mrb[46].mxu1  ;;  %v2436_v63 = vmul.f32 -1.442695, %v1097_v14  ;;  %v901_v27 = vadd.f32 %v3194_v19, %v3201_v26  ;;  %v893_v30 = vadd.f32 %v3190_v5, %v3201_v26 }
 0x15e   : > { %v2809_v17 = vpop.eup %2808  ;;  %v2532_v21 = vpop.f32.mrb[47].mxu0  ;;  %v1093_v34 = vmul.f32 %v3204_v31, %v1025_v18  ;;  %1607 = vrot.lane.b32.xlu1 %v3344_v57, %s2946_s27  ;;  %v1309_v59 = vmul.f32 %v2807_v45, %v3204_v31  ;;  %v3360_v35 = vsub.f32 %v1305_v46, %v3231_v15  ;;  %v3363_v19 = vsub.f32 %v1308_v20, %v3231_v15 }
 0x15f   : > { %v1056_v22 = vpop.f32.mrb[47].mxu1  ;;  %v2811_v24 = vpop.eup %2810  ;;  %2824 = vrcp.f32 %v1216_v8  ;;  %v1062_v39 = vadd.f32 %v2628_v62, %v901_v27  ;;  %v2530_v41 = vadd.f32 %v2529_v3, %v2528_v28  ;;  %v1054_v42 = vadd.f32 %v1053_v7, %v893_v30 }
 0x160   : > { %v3353_v32 = vpop.permute.xlu0 %1427  ;;  %v1217_v43 = vadd.f32 1.0, %v2811_v24  ;;  %2826 = vpow2.f32 %v2431_v12  ;;  %v2432_v40 = vmul.f32 -1.442695, %v1093_v34  ;;  %v1310_v53 = vmul.f32 %v2809_v17, %v3204_v31  ;;  %1609 = vrot.lane.b32.xlu0 %v3363_v19, %s2946_s27  ;;  %v3379_v62 = vpop.permute.xlu1 %1431 }
 0x161   : > { %2828 = vpow2.f32 %v2436_v63  ;;  %v2813_v5 = vpop.eup %2812  ;;  %v1102_v48 = vmul.f32 %v3204_v31, %v1062_v39  ;;  %v904_v54 = vadd.f32 %v3196_v25, %v3201_v26  ;;  %v896_v56 = vadd.f32 %v3192_v11, %v3201_v26 }
 0x162   : > { %2830 = vrcp.f32 %v1217_v43  ;;  %v2815_v47 = vpop.eup %2814  ;;  %v3374_v51 = vsub.f32 %v1309_v59, %v3231_v15  ;;  %v869_v61 = vadd.f32 %v2530_v41, %v3201_v26  ;;  %1603 = vrot.lane.b32.xlu1 %v3360_v35, %s2946_s27  ;;  %v1100_v11 = vmul.f32 %v3204_v31, %v1054_v42 }
 0x163   : > { %v2817_v58 = vpop.eup %2816  ;;  %v1218_v50 = vadd.f32 1.0, %v2815_v47  ;;  %2832 = vpow2.f32 %v2432_v40  ;;  %v3383_v49 = vsub.f32 %v1310_v53, %v3231_v15  ;;  %v1065_v0 = vadd.f32 %v2629_v16, %v904_v54 }
 0x164   : > { %v2819_v28 = vpop.eup %2818  ;;  %v1219_v25 = vadd.f32 1.0, %v2817_v58  ;;  %v3385_v2 = vpop.permute.xlu0 %1433  ;;  %v2441_v7 = vmul.f32 -1.442695, %v1102_v48  ;;  %v1030_v45 = vadd.f32 %v3267_v23, %v869_v61  ;;  %v2533_v16 = vadd.f32 %v2532_v21, %v2531_v4 }
 0x165   : > { %v2821_v1 = vpop.eup %2820  ;;  %2834 = vrcp.f32 %v1218_v50  ;;  %v1226_v3 = vadd.f32 1.0, %v2819_v28  ;;  %v1103_v46 = vmul.f32 %v3204_v31, %v1065_v0  ;;  %1613 = vrot.lane.b32.xlu0 %v3383_v49, %s2946_s27  ;;  %v1057_v17 = vadd.f32 %v1056_v22, %v896_v56  ;;  %v3397_v59 = vpop.permute.xlu1 %1435 }
 0x166   : > { %2836 = vrcp.f32 %v1219_v25  ;;  %v1224_v8 = vadd.f32 1.0, %v2821_v1  ;;  %v2823_v12 = vpop.eup %2822  ;;  %v1094_v14 = vmul.f32 %v3204_v31, %v1030_v45  ;;  %1611 = vrot.lane.b32.xlu1 %v3374_v51, %s2946_s27  ;;  %v2439_v23 = vmul.f32 -1.442695, %v1100_v11 }
 0x167   : > { %2838 = vrcp.f32 %v1226_v3  ;;  %v1227_v20 = vadd.f32 1.0, %v2823_v12  ;;  %v1311_v24 = vmul.f32 %v2813_v5, %v3204_v31  ;;  %v872_v30 = vadd.f32 %v2533_v16, %v3201_v26 }
 0x168   : > { %2840 = vrcp.f32 %v1224_v8  ;;  %v2433_v27 = vmul.f32 -1.442695, %v1094_v14  ;;  %v1101_v43 = vmul.f32 %v3204_v31, %v1057_v17  ;;  %v3403_v40 = vpop.permute.xlu0 %1437  ;;  %v2442_v41 = vmul.f32 -1.442695, %v1103_v46 }
 0x169   : > { %v2825_v18 = vpop.eup %2824  ;;  %2842 = vpow2.f32 %v2441_v7  ;;  %v3400_v21 = vsub.f32 %v1311_v24, %v3231_v15  ;;  %v1033_v26 = vadd.f32 %v3279_v38, %v872_v30  ;;  %v3418_v28 = vpop.permute.xlu1 %1439 }
 0x16a   : > { %v2827_v63 = vpop.eup %2826  ;;  %2844 = vrcp.f32 %v1227_v20  ;;  %v1312_v22 = vmul.f32 %v2825_v18, %v3204_v31  ;;  %v2440_v56 = vmul.f32 -1.442695, %v1101_v43 }
 0x16b   : > { %v2829_v34 = vpop.eup %2828  ;;  %v1220_v4 = vadd.f32 1.0, %v2827_v63  ;;  %2846 = vpow2.f32 %v2433_v27  ;;  %1615 = vrot.lane.b32.xlu1 %v3400_v21, %s2946_s27  ;;  %v1095_v53 = vmul.f32 %v3204_v31, %v1033_v26 }
 0x16c   : > { %v2831_v39 = vpop.eup %2830  ;;  %v1225_v5 = vadd.f32 1.0, %v2829_v34  ;;  %v3407_v42 = vsub.f32 %v1312_v22, %v3231_v15  ;;  %v3423_v0 = vpop.permute.xlu0 %1441 }
 0x16d   : > { %2848 = vrcp.f32 %v1220_v4  ;;  %v1313_v47 = vmul.f32 %v2831_v39, %v3204_v31  ;;  %v2833_v48 = vpop.eup %2832  ;;  %v2434_v50 = vmul.f32 -1.442695, %v1095_v53 }
 0x16e   : > { %2850 = vrcp.f32 %v1225_v5  ;;  %v1221_v54 = vadd.f32 1.0, %v2833_v48  ;;  %1617 = vrot.lane.b32.xlu0 %v3407_v42, %s2946_s27 }
 0x16f   : > { %2852 = vpow2.f32 %v2439_v23  ;;  %v3414_v58 = vsub.f32 %v1313_v47, %v3231_v15  ;;  %v2835_v38 = vpop.eup %2834  ;;  %v3441_v23 = vpop.permute.xlu1 %1443 }
 0x170   : > { %2854 = vpow2.f32 %v2442_v41  ;;  %v2837_v61 = vpop.eup %2836  ;;  %v1314_v25 = vmul.f32 %v2835_v38, %v3204_v31  ;;  %v3444_v30 = vpop.permute.xlu0 %1445 }
 0x171   : > { %2856 = vrcp.f32 %v1221_v54  ;;  %1619 = vrot.lane.b32.xlu1 %v3414_v58, %s2946_s27  ;;  %v2839_v11 = vpop.eup %2838  ;;  %v1315_v1 = vmul.f32 %v2837_v61, %v3204_v31 }
 0x172   : > { %2858 = vpow2.f32 %v2434_v50  ;;  %v2841_v3 = vpop.eup %2840  ;;  %v3427_v7 = vsub.f32 %v1314_v25, %v3231_v15  ;;  %v1322_v45 = vmul.f32 %v2839_v11, %v3204_v31 }
 0x173   : > { %2860 = vpow2.f32 %v2440_v56  ;;  %v2843_v8 = vpop.eup %2842  ;;  %v3431_v46 = vsub.f32 %v1315_v1, %v3231_v15  ;;  %v1320_v63 = vmul.f32 %v2841_v3, %v3204_v31  ;;  %v3462_v38 = vpop.permute.xlu1 %1447 }
 0x174   : > { %v2845_v12 = vpop.eup %2844  ;;  %v1230_v14 = vadd.f32 1.0, %v2843_v8  ;;  %1621 = vrot.lane.b32.xlu0 %v3427_v7, %s2946_s27  ;;  %v3436_v16 = vsub.f32 %v1322_v45, %v3231_v15  ;;  %v3466_v61 = vpop.permute.xlu0 %1449 }
 0x175   : > { %v2847_v17 = vpop.eup %2846  ;;  %1623 = vrot.lane.b32.xlu1 %v3431_v46, %s2946_s27  ;;  %v1323_v18 = vmul.f32 %v2845_v12, %v3204_v31  ;;  %v3456_v47 = vsub.f32 %v1320_v63, %v3231_v15 }
 0x176   : > { %2862 = vrcp.f32 %v1230_v14  ;;  %v1222_v24 = vadd.f32 1.0, %v2847_v17 }
 0x177   : > { %v2849_v20 = vpop.eup %2848  ;;  %v3447_v43 = vsub.f32 %v1323_v18, %v3231_v15  ;;  %4031 = vst [vmem:[#allocation2_spill] sm:$0xff] %v3456_v47  ;;  %v3481_v8 = vpop.permute.xlu1 %1451 }
 0x178   : > { %v2851_v27 = vpop.eup %2850  ;;  %1637 = vrot.lane.b32.xlu0 %v3436_v16, %s2946_s27  ;;  %2864 = vrcp.f32 %v1222_v24  ;;  %v1316_v26 = vmul.f32 %v2849_v20, %v3204_v31  ;;  %v3483_v12 = vpop.permute.xlu0 %1453 }
 0x179   : > { %v2853_v34 = vpop.eup %2852  ;;  %v1321_v4 = vmul.f32 %v2851_v27, %v3204_v31  ;;  %1639 = vrot.lane.b32.xlu1 %v3447_v43, %s2946_s27 }
 0x17a   : > { %v2855_v22 = vpop.eup %2854  ;;  %v1228_v39 = vadd.f32 1.0, %v2853_v34  ;;  %v3471_v11 = vsub.f32 %v1316_v26, %v3231_v15 }
 0x17b   : > { %v2857_v5 = vpop.eup %2856  ;;  %v1231_v41 = vadd.f32 1.0, %v2855_v22  ;;  %v3460_v54 = vsub.f32 %v1321_v4, %v3231_v15  ;;  %v3492_v27 = vpop.permute.xlu1 %1455 }
 0x17c   : > { %v2859_v48 = vpop.eup %2858  ;;  %2866 = vrcp.f32 %v1228_v39  ;;  %v1317_v53 = vmul.f32 %v2857_v5, %v3204_v31  ;;  %1633 = vrot.lane.b32.xlu0 %v3456_v47, %s2946_s27  ;;  %v3498_v39 = vpop.permute.xlu0 %1457 }
 0x17d   : > { %v2861_v56 = vpop.eup %2860  ;;  %2868 = vrcp.f32 %v1231_v41  ;;  %v1223_v50 = vadd.f32 1.0, %v2859_v48  ;;  %1635 = vrot.lane.b32.xlu1 %v3460_v54, %s2946_s27 }
 0x17e   : > { %v1229_v25 = vadd.f32 1.0, %v2861_v56  ;;  %v3474_v1 = vsub.f32 %v1317_v53, %v3231_v15 }
 0x180   : > { %2870 = vrcp.f32 %v1229_v25  ;;  %v2863_v3 = vpop.eup %2862  ;;  %1625 = vrot.lane.b32.xlu0 %v3471_v11, %s2946_s27  ;;  %v3519_v25 = vpop.permute.xlu0 %1461 }
 0x181   : > { %2872 = vrcp.f32 %v1223_v50  ;;  %v1326_v45 = vmul.f32 %v2863_v3, %v3204_v31  ;;  %1627 = vrot.lane.b32.xlu1 %v3474_v1, %s2946_s27  ;;  %v3515_v50 = vpop.permute.xlu1 %1459 }
 0x182   : > { %v2865_v17 = vpop.eup %2864 }
 0x183   : > { %v3486_v14 = vsub.f32 %v1326_v45, %v3231_v15  ;;  %v1318_v34 = vmul.f32 %v2865_v17, %v3204_v31 }
 0x184   : > { %v3530_v45 = vpop.permute.xlu0 %1465 }
 0x185   : > { %1645 = vrot.lane.b32.xlu0 %v3486_v14, %s2946_s27  ;;  %v3509_v48 = vsub.f32 %v1318_v34, %v3231_v15  ;;  %4032 = vst [vmem:[#allocation3_spill] sm:$0xff] %v3530_v45 }
 0x186   : > { %v2867_v18 = vpop.eup %2866 }
 0x187   : > { %v2869_v20 = vpop.eup %2868  ;;  %v1324_v24 = vmul.f32 %v2867_v18, %v3204_v31 }
 0x188   : > { %v1327_v63 = vmul.f32 %v2869_v20, %v3204_v31  ;;  %v3534_v18 = vpop.permute.xlu0 %1469 }
 0x189   : > { %v3496_v4 = vsub.f32 %v1324_v24, %v3231_v15  ;;  %4034 = vst [vmem:[#allocation5_spill] sm:$0xff] %v3534_v18 }
 0x18a   : > { %v2871_v22 = vpop.eup %2870  ;;  %v3501_v5 = vsub.f32 %v1327_v63, %v3231_v15 }
 0x18b   : > { %v2873_v41 = vpop.eup %2872  ;;  %v1325_v26 = vmul.f32 %v2871_v22, %v3204_v31  ;;  %1641 = vrot.lane.b32.xlu0 %v3496_v4, %s2946_s27 }
 0x18c   : > { %1647 = vrot.lane.b32.xlu1 %v3501_v5, %s2946_s27  ;;  %v1319_v53 = vmul.f32 %v2873_v41, %v3204_v31  ;;  %v3528_v31 = vpop.permute.xlu1 %1463  ;;  %v3538_v24 = vpop.permute.xlu0 %1473 }
 0x18d   : > { %v3513_v56 = vsub.f32 %v1325_v26, %v3231_v15  ;;  %4036 = vst [vmem:[#allocation7_spill] sm:$0xff] %v3538_v24 }
 0x18e   : > { %v3524_v3 = vsub.f32 %v1319_v53, %v3231_v15 }
 0x18f   : > { %1629 = vrot.lane.b32.xlu0 %v3509_v48, %s2946_s27 }
 0x190   : > { %1643 = vrot.lane.b32.xlu1 %v3513_v56, %s2946_s27  ;;  %v3532_v17 = vpop.permute.xlu1 %1467  ;;  %v3542_v34 = vpop.permute.xlu0 %1477 }
 0x191   : > { %4033 = vst [vmem:[#allocation4_spill] sm:$0xff] %v3532_v17 }
 0x194   : > { %1631 = vrot.lane.b32.xlu1 %v3524_v3, %s2946_s27  ;;  %v3536_v20 = vpop.permute.xlu1 %1471  ;;  %v3546_v22 = vpop.permute.xlu0 %1481 }
 0x195   : > { %4035 = vst [vmem:[#allocation6_spill] sm:$0xff] %v3536_v20  ;;  %4038 = vst [vmem:[#allocation9_spill] sm:$0xff] %v3546_v22 }
 0x198   : > { %v3540_v63 = vpop.permute.xlu1 %1475  ;;  %v3550_v26 = vpop.permute.xlu0 %1485 }
 0x199   : > { %4037 = vst [vmem:[#allocation8_spill] sm:$0xff] %v3540_v63  ;;  %4040 = vst [vmem:[#allocation11_spill] sm:$0xff] %v3550_v26 }
 0x19c   : > { %v3544_v15 = vpop.permute.xlu1 %1479 }
 0x1a0   : > { %v3548_v41 = vpop.permute.xlu1 %1483 }
 0x1a1   : > { %4039 = vst [vmem:[#allocation10_spill] sm:$0xff] %v3548_v41 }
 0x1a4   : > { %v3552_v17 = vpop.permute.xlu1 %1487 }
 0x1a5   : > { %4041 = vst [vmem:[#allocation12_spill] sm:$0xff] %v3552_v17 }
 0x1b6   : > { %v1590_v53 = vpop.permute.xlu0 %1589 }
 0x1b7   : > { %v1683_v18 = vmul.f32 %v1590_v53, %v3244_v44 }
 0x1b9   : > { %1749 = vrot.lane.b32.xlu0 %v1683_v18, %s2946_s27 }
 0x1ba   : > { %v1586_v20 = vpop.permute.xlu0 %1585  ;;  %v1592_v45 = vpop.permute.xlu1 %1591 }
 0x1bb   : > { %v1681_v63 = vmul.f32 %v1586_v20, %v3253_v6  ;;  %v1684_v24 = vmul.f32 %v1592_v45, %v3258_v13 }
 0x1bd   : > { %1745 = vrot.lane.b32.xlu0 %v1681_v63, %s2946_s27  ;;  %1751 = vrot.lane.b32.xlu1 %v1684_v24, %s2946_s27 }
 0x1be   : > { %v1588_v22 = vpop.permute.xlu1 %1587 }
 0x1bf   : > { %v1598_v41 = vpop.permute.xlu0 %1597  ;;  %v1682_v17 = vmul.f32 %v1588_v22, %v3277_v33 }
 0x1c0   : > { %v1687_v26 = vmul.f32 %v1598_v41, %v3273_v29 }
 0x1c1   : > { %1747 = vrot.lane.b32.xlu1 %v1682_v17, %s2946_s27 }
 0x1c2   : > { %1757 = vrot.lane.b32.xlu0 %v1687_v26, %s2946_s27  ;;  %v1600_v53 = vpop.permute.xlu1 %1599 }
 0x1c3   : > { %v1594_v18 = vpop.permute.xlu0 %1593  ;;  %v1688_v45 = vmul.f32 %v1600_v53, %v3292_v52 }
 0x1c4   : > { %v1685_v20 = vmul.f32 %v1594_v18, %v3287_v37 }
 0x1c5   : > { %1759 = vrot.lane.b32.xlu1 %v1688_v45, %s2946_s27 }
 0x1c6   : > { %1753 = vrot.lane.b32.xlu0 %v1685_v20, %s2946_s27  ;;  %v1596_v24 = vpop.permute.xlu1 %1595 }
 0x1c7   : > { %v1686_v63 = vmul.f32 %v1596_v24, %v3310_v9 }
 0x1c9   : > { %1755 = vrot.lane.b32.xlu1 %v1686_v63, %s2946_s27 }
 0x1ca   : > { %v1606_v41 = vpop.permute.xlu0 %1605 }
 0x1cb   : > { %v1691_v22 = vmul.f32 %v1606_v41, %v3322_v36 }
 0x1cd   : > { %1765 = vrot.lane.b32.xlu0 %v1691_v22, %s2946_s27 }
 0x1ce   : > { %v1602_v17 = vpop.permute.xlu0 %1601 }
 0x1cf   : > { %v1689_v26 = vmul.f32 %v1602_v17, %v3333_v60 }
 0x1d0   : > { %v1608_v18 = vpop.permute.xlu1 %1607 }
 0x1d1   : > { %1761 = vrot.lane.b32.xlu0 %v1689_v26, %s2946_s27  ;;  %v1692_v53 = vmul.f32 %v1608_v18, %v3344_v57 }
 0x1d2   : > { %v1610_v20 = vpop.permute.xlu0 %1609 }
 0x1d3   : > { %1767 = vrot.lane.b32.xlu1 %v1692_v53, %s2946_s27  ;;  %v1693_v24 = vmul.f32 %v1610_v20, %v3363_v19 }
 0x1d4   : > { %v1604_v45 = vpop.permute.xlu1 %1603 }
 0x1d5   : > { %v1690_v41 = vmul.f32 %v1604_v45, %v3360_v35  ;;  %1769 = vrot.lane.b32.xlu0 %v1693_v24, %s2946_s27 }
 0x1d7   : > { %1763 = vrot.lane.b32.xlu1 %v1690_v41, %s2946_s27  ;;  %v1614_v63 = vpop.permute.xlu0 %1613 }
 0x1d8   : > { %v1612_v22 = vpop.permute.xlu1 %1611  ;;  %v1695_v17 = vmul.f32 %v1614_v63, %v3383_v49 }
 0x1d9   : > { %v1694_v26 = vmul.f32 %v1612_v22, %v3374_v51 }
 0x1da   : > { %1773 = vrot.lane.b32.xlu0 %v1695_v17, %s2946_s27 }
 0x1db   : > { %1771 = vrot.lane.b32.xlu1 %v1694_v26, %s2946_s27 }
 0x1dd   : > { %v1616_v18 = vpop.permute.xlu1 %1615 }
 0x1de   : > { %v1696_v53 = vmul.f32 %v1616_v18, %v3400_v21 }
 0x1e0   : > { %v1618_v20 = vpop.permute.xlu0 %1617  ;;  %1775 = vrot.lane.b32.xlu1 %v1696_v53, %s2946_s27 }
 0x1e1   : > { %v1697_v45 = vmul.f32 %v1618_v20, %v3407_v42 }
 0x1e3   : > { %v1620_v24 = vpop.permute.xlu1 %1619  ;;  %1777 = vrot.lane.b32.xlu0 %v1697_v45, %s2946_s27 }
 0x1e4   : > { %v1698_v41 = vmul.f32 %v1620_v24, %v3414_v58 }
 0x1e6   : > { %1779 = vrot.lane.b32.xlu1 %v1698_v41, %s2946_s27  ;;  %v1622_v63 = vpop.permute.xlu0 %1621 }
 0x1e7   : > { %v1699_v22 = vmul.f32 %v1622_v63, %v3427_v7  ;;  %v1624_v17 = vpop.permute.xlu1 %1623 }
 0x1e8   : > { %v1700_v26 = vmul.f32 %v1624_v17, %v3431_v46 }
 0x1e9   : > { %1781 = vrot.lane.b32.xlu0 %v1699_v22, %s2946_s27 }
 0x1ea   : > { %v1638_v18 = vpop.permute.xlu0 %1637  ;;  %1783 = vrot.lane.b32.xlu1 %v1700_v26, %s2946_s27 }
 0x1eb   : > { %v1707_v53 = vmul.f32 %v1638_v18, %v3436_v16  ;;  %v1640_v20 = vpop.permute.xlu1 %1639 }
 0x1ec   : > { %v1708_v24 = vmul.f32 %v1640_v20, %v3447_v43 }
 0x1ed   : > { %1797 = vrot.lane.b32.xlu0 %v1707_v53, %s2946_s27 }
 0x1ee   : > { %v1634_v45 = vpop.permute.xlu0 %1633  ;;  %1799 = vrot.lane.b32.xlu1 %v1708_v24, %s2946_s27 }
 0x1ef   : > { %v1705_v41 = vmul.f32 %v1634_v45, %v3456_v47  ;;  %v1636_v63 = vpop.permute.xlu1 %1635 }
 0x1f0   : > { %v1706_v17 = vmul.f32 %v1636_v63, %v3460_v54 }
 0x1f1   : > { %1793 = vrot.lane.b32.xlu0 %v1705_v41, %s2946_s27 }
 0x1f2   : > { %v1626_v22 = vpop.permute.xlu0 %1625  ;;  %1795 = vrot.lane.b32.xlu1 %v1706_v17, %s2946_s27 }
 0x1f3   : > { %v1701_v26 = vmul.f32 %v1626_v22, %v3471_v11  ;;  %v1628_v18 = vpop.permute.xlu1 %1627 }
 0x1f4   : > { %v1702_v20 = vmul.f32 %v1628_v18, %v3474_v1 }
 0x1f5   : > { %1785 = vrot.lane.b32.xlu0 %v1701_v26, %s2946_s27 }
 0x1f6   : > { %1787 = vrot.lane.b32.xlu1 %v1702_v20, %s2946_s27 }
 0x1f7   : > { %v1646_v53 = vpop.permute.xlu0 %1645 }
 0x1f8   : > { %v1711_v26 = vmul.f32 %v1646_v53, %v3486_v14  ;;  %v1521_v53 = vmul.f32 %v3329_v55, %v3253_v6 }
 0x1fd   : > { %v1642_v24 = vpop.permute.xlu0 %1641 }
 0x1fe   : > { %v1648_v45 = vpop.permute.xlu1 %1647  ;;  %v1709_v47 = vmul.f32 %v1642_v24, %v3496_v4  ;;  %v1523_v24 = vmul.f32 %v3347_v10, %v3244_v44  ;;  %v1527_v10 = vmul.f32 %v3403_v40, %v3273_v29  ;;  %v1528_v40 = vmul.f32 %v3418_v28, %v3292_v52 }
 0x200   : > { %1801 = vrot.lane.b32.xlu0 %v1709_v47, %s2946_s27  ;;  %v1712_v47 = vmul.f32 %v1648_v45, %v3501_v5 }
 0x201   : > { %v1630_v41 = vpop.permute.xlu0 %1629 }
 0x202   : > { %v1644_v63 = vpop.permute.xlu1 %1643  ;;  %v1703_v17 = vmul.f32 %v1630_v41, %v3509_v48 }
 0x203   : > { %v1710_v22 = vmul.f32 %v1644_v63, %v3513_v56 }
 0x204   : > { %1789 = vrot.lane.b32.xlu0 %v1703_v17, %s2946_s27  ;;  %v1524_v17 = vmul.f32 %v3379_v62, %v3258_v13 }
 0x205   : > { %1803 = vrot.lane.b32.xlu1 %v1710_v22, %s2946_s27 }
 0x206   : > { %v1632_v18 = vpop.permute.xlu1 %1631 }
 0x207   : > { %v1704_v20 = vmul.f32 %v1632_v18, %v3524_v3 }
 0x208   : > { %1805 = vrot.lane.b32.xlu0 %v1711_v26, %s2946_s27 }
 0x209   : > { %1791 = vrot.lane.b32.xlu1 %v1704_v20, %s2946_s27  ;;  %v1522_v20 = vmul.f32 %v3353_v32, %v3277_v33 }
 0x20d   : > { %1807 = vrot.lane.b32.xlu1 %v1712_v47, %s2946_s27 }
 0x22b   : > { %v1750_v41 = vpop.permute.xlu0 %1749 }
 0x22c   : > { %v3620_v63 = vadd.f32 %v1750_v41, %v1523_v24  ;;  %v1525_v41 = vmul.f32 %v3385_v2, %v3287_v37  ;;  %v1526_v2 = vmul.f32 %v3397_v59, %v3310_v9 }
 0x22e   : > { %2874 = vtanh.f32 %v3620_v63 }
 0x22f   : > { %v1746_v22 = vpop.permute.xlu0 %1745  ;;  %v1752_v26 = vpop.permute.xlu1 %1751 }
 0x230   : > { %v3627_v18 = vadd.f32 %v1746_v22, %v1521_v53  ;;  %v3629_v45 = vadd.f32 %v1752_v26, %v1524_v17 }
 0x232   : > { %2876 = vtanh.f32 %v3627_v18 }
 0x233   : > { %2878 = vtanh.f32 %v3629_v45  ;;  %v1748_v47 = vpop.permute.xlu1 %1747 }
 0x234   : > { %v1758_v55 = vpop.permute.xlu0 %1757  ;;  %v3639_v62 = vadd.f32 %v1748_v47, %v1522_v20 }
 0x235   : > { %v3637_v24 = vadd.f32 %v1758_v55, %v1527_v10  ;;  %v1531_v55 = vmul.f32 %v3444_v30, %v3322_v36 }
 0x237   : > { %2880 = vtanh.f32 %v3637_v24  ;;  %v1760_v17 = vpop.permute.xlu1 %1759 }
 0x238   : > { %2882 = vtanh.f32 %v3639_v62  ;;  %v1754_v53 = vpop.permute.xlu0 %1753  ;;  %v2875_v32 = vpop.eup %2874  ;;  %v3649_v26 = vadd.f32 %v1760_v17, %v1528_v40 }
 0x239   : > { %v3647_v22 = vadd.f32 %v1754_v53, %v1525_v41  ;;  %1941 = vrot.lane.b32.xlu0 %v2875_v32, %s2946_s27  ;;  %v1529_v32 = vmul.f32 %v3423_v0, %v3333_v60 }
 0x23b   : > { %2884 = vtanh.f32 %v3647_v22  ;;  %v1756_v28 = vpop.permute.xlu1 %1755 }
 0x23c   : > { %2886 = vtanh.f32 %v3649_v26  ;;  %v2877_v10 = vpop.eup %2876  ;;  %v3658_v47 = vadd.f32 %v1756_v28, %v1526_v2 }
 0x23d   : > { %v2879_v20 = vpop.eup %2878  ;;  %1937 = vrot.lane.b32.xlu0 %v2877_v10, %s2946_s27  ;;  %v1532_v10 = vmul.f32 %v3462_v38, %v3344_v57 }
 0x23e   : > { %1943 = vrot.lane.b32.xlu1 %v2879_v20, %s2946_s27  ;;  %2888 = vtanh.f32 %v3658_v47 }
 0x23f   : > { %v1766_v41 = vpop.permute.xlu0 %1765 }
 0x240   : > { %v3663_v40 = vadd.f32 %v1766_v41, %v1531_v55  ;;  %v1533_v55 = vmul.f32 %v3466_v61, %v3363_v19  ;;  %v1530_v41 = vmul.f32 %v3441_v23, %v3360_v35  ;;  %v1534_v23 = vmul.f32 %v3481_v8, %v3374_v51 }
 0x241   : > { %v2881_v59 = vpop.eup %2880  ;;  %v1536_v8 = vmul.f32 %v3492_v27, %v3400_v21 }
 0x242   : > { %v2883_v53 = vpop.eup %2882  ;;  %2890 = vtanh.f32 %v3663_v40  ;;  %1949 = vrot.lane.b32.xlu0 %v2881_v59, %s2946_s27 }
 0x243   : > { %1939 = vrot.lane.b32.xlu1 %v2883_v53, %s2946_s27  ;;  %v1762_v30 = vpop.permute.xlu0 %1761 }
 0x244   : > { %v3670_v17 = vadd.f32 %v1762_v30, %v1529_v32 }
 0x245   : > { %v2885_v2 = vpop.eup %2884  ;;  %v1768_v20 = vpop.permute.xlu1 %1767 }
 0x246   : > { %v2887_v28 = vpop.eup %2886  ;;  %2892 = vtanh.f32 %v3670_v17  ;;  %1945 = vrot.lane.b32.xlu0 %v2885_v2, %s2946_s27  ;;  %v3676_v0 = vadd.f32 %v1768_v20, %v1532_v10  ;;  %v1535_v10 = vmul.f32 %v3483_v12, %v3383_v49 }
 0x247   : > { %1951 = vrot.lane.b32.xlu1 %v2887_v28, %s2946_s27  ;;  %v1770_v59 = vpop.permute.xlu0 %1769 }
 0x248   : > { %2894 = vtanh.f32 %v3676_v0  ;;  %v2889_v38 = vpop.eup %2888  ;;  %v3684_v32 = vadd.f32 %v1770_v59, %v1533_v55 }
 0x249   : > { %v1764_v53 = vpop.permute.xlu1 %1763 }
 0x24a   : > { %v3686_v30 = vadd.f32 %v1764_v53, %v1530_v41  ;;  %2896 = vtanh.f32 %v3684_v32 }
 0x24b   : > { %1947 = vrot.lane.b32.xlu1 %v2889_v38, %s2946_s27  ;;  %v1537_v38 = vmul.f32 %v3498_v39, %v3407_v42 }
 0x24c   : > { %v2891_v2 = vpop.eup %2890  ;;  %2898 = vtanh.f32 %v3686_v30  ;;  %v1774_v61 = vpop.permute.xlu0 %1773 }
 0x24d   : > { %1957 = vrot.lane.b32.xlu0 %v2891_v2, %s2946_s27  ;;  %v1772_v28 = vpop.permute.xlu1 %1771  ;;  %v3696_v20 = vadd.f32 %v1774_v61, %v1535_v10 }
 0x24e   : > { %v3698_v55 = vadd.f32 %v1772_v28, %v1534_v23  ;;  %v1538_v23 = vmul.f32 %v3515_v50, %v3414_v58 }
 0x24f   : > { %2900 = vtanh.f32 %v3696_v20 }
 0x250   : > { %4042 = vst [vmem:[#allocation13_spill] sm:$0xff] %v3698_v55  ;;  %v2893_v41 = vpop.eup %2892  ;;  %2902 = vtanh.f32 %v3698_v55 }
 0x251   : > { %1953 = vrot.lane.b32.xlu0 %v2893_v41, %s2946_s27 }
 0x252   : > { %v2895_v12 = vpop.eup %2894  ;;  %v1776_v59 = vpop.permute.xlu1 %1775 }
 0x253   : > { %v3707_v53 = vadd.f32 %v1776_v59, %v1536_v8  ;;  %1959 = vrot.lane.b32.xlu1 %v2895_v12, %s2946_s27  ;;  %v1539_v8 = vmul.f32 %v3519_v25, %v3427_v7  ;;  %v1540_v12 = vmul.f32 %v3528_v31, %v3431_v46  ;;  %v1548_v25 = vmul.f32 %v3544_v15, %v3447_v43 }
 0x254   : > { %v2897_v10 = vpop.eup %2896 }
 0x255   : > { %4043 = vst [vmem:[#allocation14_spill] sm:$0xff] %v3707_v53  ;;  %v1778_v2 = vpop.permute.xlu0 %1777  ;;  %2904 = vtanh.f32 %v3707_v53  ;;  %1961 = vrot.lane.b32.xlu0 %v2897_v10, %s2946_s27 }
 0x256   : > { %v3713_v61 = vadd.f32 %v1778_v2, %v1537_v38  ;;  %v2899_v28 = vpop.eup %2898 }
 0x257   : > { %1955 = vrot.lane.b32.xlu1 %v2899_v28, %s2946_s27 }
 0x258   : > { %4044 = vst [vmem:[#allocation15_spill] sm:$0xff] %v3713_v61  ;;  %v1780_v27 = vpop.permute.xlu1 %1779  ;;  %2906 = vtanh.f32 %v3713_v61 }
 0x259   : > { %v3718_v39 = vadd.f32 %v1780_v27, %v1538_v23  ;;  %v2901_v41 = vpop.eup %2900  ;;  %v1547_v23 = vmul.f32 %v3542_v34, %v3436_v16 }
 0x25a   : > { %v2903_v50 = vpop.eup %2902  ;;  %1965 = vrot.lane.b32.xlu0 %v2901_v41, %s2946_s27 }
 0x25b   : > { %4045 = vst [vmem:[#allocation16_spill] sm:$0xff] %v3718_v39  ;;  %2908 = vtanh.f32 %v3718_v39  ;;  %v1782_v59 = vpop.permute.xlu0 %1781  ;;  %1963 = vrot.lane.b32.xlu1 %v2903_v50, %s2946_s27 }
 0x25c   : > { %v3727_v38 = vadd.f32 %v1782_v59, %v1539_v8  ;;  %v1784_v2 = vpop.permute.xlu1 %1783  ;;  %v4051_v59 = vld [vmem:[#allocation7_spill] sm:$0xff] }
 0x25d   : > { %v3729_v10 = vadd.f32 %v1784_v2, %v1540_v12  ;;  %v4050_v12 = vld [vmem:[#allocation2_spill] sm:$0xff]  ;;  %v4052_v2 = vld [vmem:[#allocation8_spill] sm:$0xff] }
 0x25e   : > { %4046 = vst [vmem:[#allocation17_spill] sm:$0xff] %v3727_v38  ;;  %2910 = vtanh.f32 %v3727_v38  ;;  %v1545_v34 = vmul.f32 %v4051_v59, %v4050_v12  ;;  %v1546_v15 = vmul.f32 %v4052_v2, %v3460_v54  ;;  %v4056_v2 = vld [vmem:[#allocation4_spill] sm:$0xff] }
 0x25f   : > { %4047 = vst [vmem:[#allocation18_spill] sm:$0xff] %v3729_v10  ;;  %2912 = vtanh.f32 %v3729_v10  ;;  %v1798_v31 = vpop.permute.xlu0 %1797  ;;  %v2905_v28 = vpop.eup %2904 }
 0x260   : > { %v3737_v27 = vadd.f32 %v1798_v31, %v1547_v23  ;;  %v1800_v41 = vpop.permute.xlu1 %1799  ;;  %1967 = vrot.lane.b32.xlu1 %v2905_v28, %s2946_s27 }
 0x261   : > { %v3740_v8 = vadd.f32 %v1800_v41, %v1548_v25  ;;  %v4055_v41 = vld [vmem:[#allocation3_spill] sm:$0xff] }
 0x262   : > { %4048 = vst [vmem:[#allocation19_spill] sm:$0xff] %v3737_v27  ;;  %v2907_v50 = vpop.eup %2906  ;;  %2914 = vtanh.f32 %v3737_v27  ;;  %v1541_v59 = vmul.f32 %v4055_v41, %v3471_v11  ;;  %v1542_v27 = vmul.f32 %v4056_v2, %v3474_v1 }
 0x263   : > { %4049 = vst [vmem:[#allocation20_spill] sm:$0xff] %v3740_v8  ;;  %2916 = vtanh.f32 %v3740_v8  ;;  %1969 = vrot.lane.b32.xlu0 %v2907_v50, %s2946_s27  ;;  %v1794_v23 = vpop.permute.xlu0 %1793 }
 0x264   : > { %v3749_v10 = vadd.f32 %v1794_v23, %v1545_v34  ;;  %v1796_v28 = vpop.permute.xlu1 %1795 }
 0x265   : > { %v2909_v31 = vpop.eup %2908  ;;  %v3752_v25 = vadd.f32 %v1796_v28, %v1546_v15 }
 0x266   : > { %4053 = vst [vmem:[#allocation2_spill] sm:$0xff] %v3749_v10  ;;  %1971 = vrot.lane.b32.xlu1 %v2909_v31, %s2946_s27  ;;  %2918 = vtanh.f32 %v3749_v10  ;;  %v4062_v10 = vld [vmem:[#allocation5_spill] sm:$0xff] }
 0x267   : > { %4054 = vst [vmem:[#allocation7_spill] sm:$0xff] %v3752_v25  ;;  %2920 = vtanh.f32 %v3752_v25  ;;  %v1786_v50 = vpop.permute.xlu0 %1785 }
 0x268   : > { %v2911_v8 = vpop.eup %2910  ;;  %v3760_v38 = vadd.f32 %v1786_v50, %v1541_v59  ;;  %v1788_v34 = vpop.permute.xlu1 %1787 }
 0x269   : > { %v2913_v23 = vpop.eup %2912  ;;  %v3762_v39 = vadd.f32 %v1788_v34, %v1542_v27  ;;  %1973 = vrot.lane.b32.xlu0 %v2911_v8, %s2946_s27  ;;  %v4059_v34 = vld [vmem:[#allocation11_spill] sm:$0xff] }
 0x26a   : > { %4057 = vst [vmem:[#allocation8_spill] sm:$0xff] %v3760_v38  ;;  %2922 = vtanh.f32 %v3760_v38  ;;  %1975 = vrot.lane.b32.xlu1 %v2913_v23, %s2946_s27  ;;  %v1551_v23 = vmul.f32 %v4059_v34, %v3486_v14  ;;  %v4063_v34 = vld [vmem:[#allocation10_spill] sm:$0xff] }
 0x26b   : > { %4058 = vst [vmem:[#allocation3_spill] sm:$0xff] %v3762_v39  ;;  %2924 = vtanh.f32 %v3762_v39  ;;  %v1550_v53 = vmul.f32 %v4063_v34, %v3513_v56 }
 0x26c   : > { %v2915_v15 = vpop.eup %2914 }
 0x26d   : > { %v2917_v31 = vpop.eup %2916  ;;  %1989 = vrot.lane.b32.xlu0 %v2915_v15, %s2946_s27 }
 0x26e   : > { %1991 = vrot.lane.b32.xlu1 %v2917_v31, %s2946_s27  ;;  %v4060_v31 = vld [vmem:[#allocation9_spill] sm:$0xff] }
 0x26f   : > { %v1549_v39 = vmul.f32 %v4060_v31, %v3496_v4 }
 0x270   : > { %v2919_v28 = vpop.eup %2918 }
 0x271   : > { %v2921_v41 = vpop.eup %2920  ;;  %1985 = vrot.lane.b32.xlu0 %v2919_v28, %s2946_s27 }
 0x272   : > { %v1802_v59 = vpop.permute.xlu0 %1801  ;;  %1987 = vrot.lane.b32.xlu1 %v2921_v41, %s2946_s27  ;;  %v4061_v41 = vld [vmem:[#allocation12_spill] sm:$0xff] }
 0x273   : > { %v3780_v28 = vadd.f32 %v1802_v59, %v1549_v39  ;;  %v4064_v59 = vld [vmem:[#allocation6_spill] sm:$0xff] }
 0x274   : > { %v2923_v27 = vpop.eup %2922 }
 0x275   : > { %v2925_v8 = vpop.eup %2924  ;;  %1977 = vrot.lane.b32.xlu0 %v2923_v27, %s2946_s27  ;;  %v1552_v27 = vmul.f32 %v4061_v41, %v3501_v5 }
 0x276   : > { %v1790_v2 = vpop.permute.xlu0 %1789  ;;  %1979 = vrot.lane.b32.xlu1 %v2925_v8, %s2946_s27  ;;  %v1543_v8 = vmul.f32 %v4062_v10, %v3509_v48 }
 0x277   : > { %v1804_v50 = vpop.permute.xlu1 %1803 }
 0x278   : > { %v3794_v39 = vadd.f32 %v1804_v50, %v1550_v53 }
 0x27a   : > { %v1806_v15 = vpop.permute.xlu0 %1805 }
 0x27b   : > { %v1792_v38 = vpop.permute.xlu1 %1791  ;;  %v3778_v25 = vadd.f32 %v1806_v15, %v1551_v23  ;;  %v3792_v23 = vadd.f32 %v1790_v2, %v1543_v8  ;;  %v1544_v15 = vmul.f32 %v4064_v59, %v3524_v3 }
 0x27d   : > { %2926 = vtanh.f32 %v3778_v25  ;;  %v3801_v10 = vadd.f32 %v1792_v38, %v1544_v15 }
 0x27e   : > { %2928 = vtanh.f32 %v3780_v28 }
 0x27f   : > { %v1808_v61 = vpop.permute.xlu1 %1807 }
 0x280   : > { %v3789_v55 = vadd.f32 %v1808_v61, %v1552_v27 }
 0x282   : > { %2930 = vtanh.f32 %v3789_v55 }
 0x283   : > { %2932 = vtanh.f32 %v3792_v23 }
 0x284   : > { %2934 = vtanh.f32 %v3794_v39 }
 0x285   : > { %2936 = vtanh.f32 %v3801_v10 }
 0x287   : > { %v2927_v31 = vpop.eup %2926 }
 0x288   : > { %1997 = vrot.lane.b32.xlu0 %v2927_v31, %s2946_s27  ;;  %v2929_v61 = vpop.eup %2928 }
 0x28c   : > { %v2931_v2 = vpop.eup %2930  ;;  %1993 = vrot.lane.b32.xlu0 %v2929_v61, %s2946_s27 }
 0x28d   : > { %1999 = vrot.lane.b32.xlu1 %v2931_v2, %s2946_s27  ;;  %v2933_v53 = vpop.eup %2932 }
 0x28e   : > { %v2935_v50 = vpop.eup %2934 }
 0x28f   : > { %v2937_v41 = vpop.eup %2936 }
 0x290   : > { %1981 = vrot.lane.b32.xlu0 %v2933_v53, %s2946_s27 }
 0x291   : > { %1995 = vrot.lane.b32.xlu1 %v2935_v50, %s2946_s27 }
 0x295   : > { %1983 = vrot.lane.b32.xlu1 %v2937_v41, %s2946_s27 }
 0x2ab   : > { %v1942_v38 = vpop.permute.xlu0 %1941 }
 0x2ac   : > { %v2035_v27 = vmul.f32 %v1942_v38, %v3244_v44 }
 0x2ae   : > { %2101 = vrot.lane.b32.xlu0 %v2035_v27, %s2948_s29 }
 0x2af   : > { %v1938_v8 = vpop.permute.xlu0 %1937 }
 0x2b0   : > { %v1944_v34 = vpop.permute.xlu1 %1943  ;;  %v2033_v59 = vmul.f32 %v1938_v8, %v3253_v6 }
 0x2b1   : > { %v2036_v15 = vmul.f32 %v1944_v34, %v3258_v13 }
 0x2b2   : > { %2097 = vrot.lane.b32.xlu0 %v2033_v59, %s2948_s29 }
 0x2b3   : > { %2103 = vrot.lane.b32.xlu1 %v2036_v15, %s2948_s29 }
 0x2b4   : > { %v1950_v31 = vpop.permute.xlu0 %1949 }
 0x2b5   : > { %v1940_v61 = vpop.permute.xlu1 %1939  ;;  %v2039_v2 = vmul.f32 %v1950_v31, %v3273_v29 }
 0x2b6   : > { %v2034_v53 = vmul.f32 %v1940_v61, %v3277_v33 }
 0x2b7   : > { %2109 = vrot.lane.b32.xlu0 %v2039_v2, %s2948_s29 }
 0x2b8   : > { %2099 = vrot.lane.b32.xlu1 %v2034_v53, %s2948_s29  ;;  %v1946_v44 = vpop.permute.xlu0 %1945 }
 0x2b9   : > { %v1952_v50 = vpop.permute.xlu1 %1951  ;;  %v2037_v6 = vmul.f32 %v1946_v44, %v3287_v37 }
 0x2ba   : > { %v2040_v13 = vmul.f32 %v1952_v50, %v3292_v52 }
 0x2bb   : > { %2105 = vrot.lane.b32.xlu0 %v2037_v6, %s2948_s29 }
 0x2bc   : > { %2111 = vrot.lane.b32.xlu1 %v2040_v13, %s2948_s29 }
 0x2bd   : > { %v1948_v41 = vpop.permute.xlu1 %1947 }
 0x2be   : > { %v2038_v38 = vmul.f32 %v1948_v41, %v3310_v9 }
 0x2bf   : > { %v1958_v29 = vpop.permute.xlu0 %1957 }
 0x2c0   : > { %v2043_v33 = vmul.f32 %v1958_v29, %v3322_v36  ;;  %2107 = vrot.lane.b32.xlu1 %v2038_v38, %s2948_s29 }
 0x2c2   : > { %2117 = vrot.lane.b32.xlu0 %v2043_v33, %s2948_s29 }
 0x2c3   : > { %v1954_v27 = vpop.permute.xlu0 %1953 }
 0x2c4   : > { %v2041_v8 = vmul.f32 %v1954_v27, %v3333_v60 }
 0x2c5   : > { %v1960_v37 = vpop.permute.xlu1 %1959 }
 0x2c6   : > { %2113 = vrot.lane.b32.xlu0 %v2041_v8, %s2948_s29  ;;  %v2044_v52 = vmul.f32 %v1960_v37, %v3344_v57 }
 0x2c7   : > { %v1962_v34 = vpop.permute.xlu0 %1961 }
 0x2c8   : > { %2119 = vrot.lane.b32.xlu1 %v2044_v52, %s2948_s29  ;;  %v2045_v9 = vmul.f32 %v1962_v34, %v3363_v19 }
 0x2c9   : > { %v1956_v59 = vpop.permute.xlu1 %1955 }
 0x2ca   : > { %v2042_v36 = vmul.f32 %v1956_v59, %v3360_v35  ;;  %2121 = vrot.lane.b32.xlu0 %v2045_v9, %s2948_s29 }
 0x2cc   : > { %2115 = vrot.lane.b32.xlu1 %v2042_v36, %s2948_s29  ;;  %v1966_v15 = vpop.permute.xlu0 %1965 }
 0x2cd   : > { %v1964_v31 = vpop.permute.xlu1 %1963  ;;  %v2047_v60 = vmul.f32 %v1966_v15, %v3383_v49 }
 0x2ce   : > { %v2046_v61 = vmul.f32 %v1964_v31, %v3374_v51 }
 0x2cf   : > { %2125 = vrot.lane.b32.xlu0 %v2047_v60, %s2948_s29 }
 0x2d0   : > { %2123 = vrot.lane.b32.xlu1 %v2046_v61, %s2948_s29 }
 0x2d2   : > { %v1968_v57 = vpop.permute.xlu1 %1967 }
 0x2d3   : > { %v2048_v2 = vmul.f32 %v1968_v57, %v3400_v21 }
 0x2d5   : > { %v1970_v19 = vpop.permute.xlu0 %1969  ;;  %2127 = vrot.lane.b32.xlu1 %v2048_v2, %s2948_s29 }
 0x2d6   : > { %v2049_v35 = vmul.f32 %v1970_v19, %v3407_v42 }
 0x2d8   : > { %v1972_v53 = vpop.permute.xlu1 %1971  ;;  %2129 = vrot.lane.b32.xlu0 %v2049_v35, %s2948_s29 }
 0x2d9   : > { %v2050_v44 = vmul.f32 %v1972_v53, %v3414_v58 }
 0x2db   : > { %2131 = vrot.lane.b32.xlu1 %v2050_v44, %s2948_s29  ;;  %v1974_v51 = vpop.permute.xlu0 %1973 }
 0x2dc   : > { %v2051_v49 = vmul.f32 %v1974_v51, %v3427_v7  ;;  %v1976_v50 = vpop.permute.xlu1 %1975 }
 0x2dd   : > { %v2052_v6 = vmul.f32 %v1976_v50, %v3431_v46  ;;  %v4065_v50 = vld [vmem:[#allocation13_spill] sm:$0xff] }
 0x2de   : > { %2133 = vrot.lane.b32.xlu0 %v2051_v49, %s2948_s29 }
 0x2df   : > { %v1990_v21 = vpop.permute.xlu0 %1989  ;;  %2135 = vrot.lane.b32.xlu1 %v2052_v6, %s2948_s29 }
 0x2e0   : > { %v2059_v42 = vmul.f32 %v1990_v21, %v3436_v16  ;;  %v1992_v13 = vpop.permute.xlu1 %1991 }
 0x2e1   : > { %v2060_v58 = vmul.f32 %v1992_v13, %v3447_v43  ;;  %v4067_v13 = vld [vmem:[#allocation15_spill] sm:$0xff] }
 0x2e2   : > { %2149 = vrot.lane.b32.xlu0 %v2059_v42, %s2948_s29 }
 0x2e3   : > { %v1986_v41 = vpop.permute.xlu0 %1985  ;;  %2151 = vrot.lane.b32.xlu1 %v2060_v58, %s2948_s29 }
 0x2e4   : > { %v2057_v7 = vmul.f32 %v1986_v41, %v4050_v12  ;;  %v1988_v38 = vpop.permute.xlu1 %1987  ;;  %v4068_v41 = vld [vmem:[#allocation16_spill] sm:$0xff] }
 0x2e5   : > { %v2058_v46 = vmul.f32 %v1988_v38, %v3460_v54 }
 0x2e6   : > { %2145 = vrot.lane.b32.xlu0 %v2057_v7, %s2948_s29 }
 0x2e7   : > { %v1978_v29 = vpop.permute.xlu0 %1977  ;;  %2147 = vrot.lane.b32.xlu1 %v2058_v46, %s2948_s29  ;;  %v4069_v46 = vld [vmem:[#allocation17_spill] sm:$0xff] }
 0x2e8   : > { %v2053_v16 = vmul.f32 %v1978_v29, %v3471_v11  ;;  %v1980_v33 = vpop.permute.xlu1 %1979 }
 0x2e9   : > { %v2054_v43 = vmul.f32 %v1980_v33, %v3474_v1  ;;  %v4070_v33 = vld [vmem:[#allocation18_spill] sm:$0xff] }
 0x2ea   : > { %2137 = vrot.lane.b32.xlu0 %v2053_v16, %s2948_s29 }
 0x2eb   : > { %2139 = vrot.lane.b32.xlu1 %v2054_v43, %s2948_s29 }
 0x2fa   : > { %v1998_v27 = vpop.permute.xlu0 %1997 }
 0x2fb   : > { %v2063_v1 = vmul.f32 %v1998_v27, %v3486_v14 }
 0x2fe   : > { %v1994_v8 = vpop.permute.xlu0 %1993 }
 0x2ff   : > { %v2000_v12 = vpop.permute.xlu1 %1999  ;;  %v2061_v37 = vmul.f32 %v1994_v8, %v3496_v4  ;;  %v4071_v8 = vld [vmem:[#allocation19_spill] sm:$0xff] }
 0x300   : > { %v2064_v4 = vmul.f32 %v2000_v12, %v3501_v5 }
 0x301   : > { %2153 = vrot.lane.b32.xlu0 %v2061_v37, %s2948_s29 }
 0x302   : > { %v1982_v54 = vpop.permute.xlu0 %1981 }
 0x303   : > { %v1996_v52 = vpop.permute.xlu1 %1995  ;;  %v2055_v34 = vmul.f32 %v1982_v54, %v3509_v48  ;;  %v4072_v54 = vld [vmem:[#allocation20_spill] sm:$0xff] }
 0x304   : > { %v2062_v11 = vmul.f32 %v1996_v52, %v3513_v56 }
 0x305   : > { %2141 = vrot.lane.b32.xlu0 %v2055_v34, %s2948_s29 }
 0x306   : > { %2155 = vrot.lane.b32.xlu1 %v2062_v11, %s2948_s29  ;;  %v4073_v11 = vld [vmem:[#allocation2_spill] sm:$0xff] }
 0x307   : > { %v1984_v59 = vpop.permute.xlu1 %1983 }
 0x308   : > { %v2056_v9 = vmul.f32 %v1984_v59, %v3524_v3 }
 0x309   : > { %2157 = vrot.lane.b32.xlu0 %v2063_v1, %s2948_s29 }
 0x30a   : > { %2143 = vrot.lane.b32.xlu1 %v2056_v9, %s2948_s29  ;;  %v4074_v9 = vld [vmem:[#allocation7_spill] sm:$0xff] }
 0x30e   : > { %2159 = vrot.lane.b32.xlu1 %v2064_v4, %s2948_s29 }
 0x320   : > { %v2102_v14 = vpop.permute.xlu0 %2101 }
 0x321   : > { %v2196_v48 = vsel %vm2193_vm1, %v2102_v14, %v3620_v63 }
 0x322   : > { %2229 = vst.msk [vmem:[%s3879_s6 + $0x10] sm:$0xff] %vm2226_vm2, %v2196_v48  ;;  %v4075_v48 = vld [vmem:[#allocation8_spill] sm:$0xff] }
 0x324   : > { %v2098_v5 = vpop.permute.xlu0 %2097 }
 0x325   : > { %v2104_v56 = vpop.permute.xlu1 %2103  ;;  %v2194_v3 = vsel %vm2193_vm1, %v2098_v5, %v3627_v18 }
 0x326   : > { %v2197_v36 = vsel %vm2193_vm1, %v2104_v56, %v3629_v45  ;;  %2227 = vst.msk [vmem:[%s3879_s6] sm:$0xff] %vm2226_vm2, %v2194_v3  ;;  %v4076_v3 = vld [vmem:[#allocation3_spill] sm:$0xff] }
 0x327   : > { %2230 = vst.msk [vmem:[%s3879_s6 + $0x18] sm:$0xff] %vm2226_vm2, %v2197_v36 }
 0x329   : > { %v2110_v15 = vpop.permute.xlu0 %2109 }
 0x32a   : > { %v2100_v31 = vpop.permute.xlu1 %2099  ;;  %v2200_v63 = vsel %vm2193_vm1, %v2110_v15, %v3637_v24 }
 0x32b   : > { %v2195_v60 = vsel %vm2193_vm1, %v2100_v31, %v3639_v62  ;;  %2233 = vst.msk [vmem:[%s3879_s6 + $0x30] sm:$0xff] %vm2226_vm2, %v2200_v63 }
 0x32c   : > { %2228 = vst.msk [vmem:[%s3879_s6 + $0x8] sm:$0xff] %vm2226_vm2, %v2195_v60 }
 0x32d   : > { %v2106_v18 = vpop.permute.xlu0 %2105 }
 0x32e   : > { %v2112_v45 = vpop.permute.xlu1 %2111  ;;  %v2198_v61 = vsel %vm2193_vm1, %v2106_v18, %v3647_v22 }
 0x32f   : > { %v2201_v57 = vsel %vm2193_vm1, %v2112_v45, %v3649_v26  ;;  %2231 = vst.msk [vmem:[%s3879_s6 + $0x20] sm:$0xff] %vm2226_vm2, %v2198_v61 }
 0x330   : > { %2234 = vst.msk [vmem:[%s3879_s6 + $0x38] sm:$0xff] %vm2226_vm2, %v2201_v57 }
 0x332   : > { %v2108_v24 = vpop.permute.xlu1 %2107 }
 0x333   : > { %v2199_v62 = vsel %vm2193_vm1, %v2108_v24, %v3658_v47 }
 0x334   : > { %2232 = vst.msk [vmem:[%s3879_s6 + $0x28] sm:$0xff] %vm2226_vm2, %v2199_v62  ;;  %v2118_v2 = vpop.permute.xlu0 %2117 }
 0x335   : > { %v2204_v19 = vsel %vm2193_vm1, %v2118_v2, %v3663_v40 }
 0x336   : > { %2237 = vst.msk [vmem:[%s3879_s6 + $0x50] sm:$0xff] %vm2226_vm2, %v2204_v19 }
 0x338   : > { %v2114_v22 = vpop.permute.xlu0 %2113 }
 0x339   : > { %v2202_v26 = vsel %vm2193_vm1, %v2114_v22, %v3670_v17 }
 0x33a   : > { %2235 = vst.msk [vmem:[%s3879_s6 + $0x40] sm:$0xff] %vm2226_vm2, %v2202_v26  ;;  %v2120_v35 = vpop.permute.xlu1 %2119 }
 0x33b   : > { %v2205_v47 = vsel %vm2193_vm1, %v2120_v35, %v3676_v0 }
 0x33c   : > { %2238 = vst.msk [vmem:[%s3879_s6 + $0x58] sm:$0xff] %vm2226_vm2, %v2205_v47  ;;  %v2122_v53 = vpop.permute.xlu0 %2121 }
 0x33d   : > { %v2206_v40 = vsel %vm2193_vm1, %v2122_v53, %v3684_v32 }
 0x33e   : > { %v2116_v44 = vpop.permute.xlu1 %2115  ;;  %2239 = vst.msk [vmem:[%s3879_s6 + $0x60] sm:$0xff] %vm2226_vm2, %v2206_v40 }
 0x33f   : > { %v2203_v51 = vsel %vm2193_vm1, %v2116_v44, %v3686_v30  ;;  %v4066_v30 = vld [vmem:[#allocation14_spill] sm:$0xff] }
 0x340   : > { %2236 = vst.msk [vmem:[%s3879_s6 + $0x48] sm:$0xff] %vm2226_vm2, %v2203_v51 }
 0x341   : > { %v2126_v17 = vpop.permute.xlu0 %2125 }
 0x342   : > { %v2124_v49 = vpop.permute.xlu1 %2123  ;;  %v2208_v0 = vsel %vm2193_vm1, %v2126_v17, %v3696_v20 }
 0x343   : > { %v2207_v6 = vsel %vm2193_vm1, %v2124_v49, %v4065_v50  ;;  %2241 = vst.msk [vmem:[%s3879_s6 + $0x70] sm:$0xff] %vm2226_vm2, %v2208_v0 }
 0x344   : > { %2240 = vst.msk [vmem:[%s3879_s6 + $0x68] sm:$0xff] %vm2226_vm2, %v2207_v6 }
 0x347   : > { %v2128_v32 = vpop.permute.xlu1 %2127 }
 0x348   : > { %v2209_v21 = vsel %vm2193_vm1, %v2128_v32, %v4066_v30 }
 0x349   : > { %2242 = vst.msk [vmem:[%s3879_s6 + $0x78] sm:$0xff] %vm2226_vm2, %v2209_v21 }
 0x34a   : > { %v2130_v42 = vpop.permute.xlu0 %2129 }
 0x34b   : > { %v2210_v20 = vsel %vm2193_vm1, %v2130_v42, %v4067_v13 }
 0x34c   : > { %2243 = vst.msk [vmem:[%s3879_s6 + $0x80] sm:$0xff] %vm2226_vm2, %v2210_v20 }
 0x34d   : > { %v2132_v58 = vpop.permute.xlu1 %2131 }
 0x34e   : > { %v2211_v7 = vsel %vm2193_vm1, %v2132_v58, %v4068_v41 }
 0x34f   : > { %2244 = vst.msk [vmem:[%s3879_s6 + $0x88] sm:$0xff] %vm2226_vm2, %v2211_v7 }
 0x350   : > { %v2134_v38 = vpop.permute.xlu0 %2133 }
 0x351   : > { %v2212_v29 = vsel %vm2193_vm1, %v2134_v38, %v4069_v46  ;;  %v2136_v16 = vpop.permute.xlu1 %2135 }
 0x352   : > { %2245 = vst.msk [vmem:[%s3879_s6 + $0x90] sm:$0xff] %vm2226_vm2, %v2212_v29  ;;  %v2213_v43 = vsel %vm2193_vm1, %v2136_v16, %v4070_v33 }
 0x353   : > { %2246 = vst.msk [vmem:[%s3879_s6 + $0x98] sm:$0xff] %vm2226_vm2, %v2213_v43 }
 0x354   : > { %v2150_v27 = vpop.permute.xlu0 %2149 }
 0x355   : > { %v2220_v12 = vsel %vm2193_vm1, %v2150_v27, %v4071_v8  ;;  %v2152_v37 = vpop.permute.xlu1 %2151 }
 0x356   : > { %2253 = vst.msk [vmem:[%s3879_s6 + $0xd0] sm:$0xff] %vm2226_vm2, %v2220_v12  ;;  %v2221_v52 = vsel %vm2193_vm1, %v2152_v37, %v4072_v54 }
 0x357   : > { %2254 = vst.msk [vmem:[%s3879_s6 + $0xd8] sm:$0xff] %vm2226_vm2, %v2221_v52 }
 0x358   : > { %v2146_v34 = vpop.permute.xlu0 %2145 }
 0x359   : > { %v2218_v1 = vsel %vm2193_vm1, %v2146_v34, %v4073_v11  ;;  %v2148_v59 = vpop.permute.xlu1 %2147 }
 0x35a   : > { %2251 = vst.msk [vmem:[%s3879_s6 + $0xc0] sm:$0xff] %vm2226_vm2, %v2218_v1  ;;  %v2219_v4 = vsel %vm2193_vm1, %v2148_v59, %v4074_v9 }
 0x35b   : > { %2252 = vst.msk [vmem:[%s3879_s6 + $0xc8] sm:$0xff] %vm2226_vm2, %v2219_v4 }
 0x35c   : > { %v2138_v14 = vpop.permute.xlu0 %2137 }
 0x35d   : > { %v2214_v5 = vsel %vm2193_vm1, %v2138_v14, %v4075_v48  ;;  %v2140_v56 = vpop.permute.xlu1 %2139 }
 0x35e   : > { %2247 = vst.msk [vmem:[%s3879_s6 + $0xa0] sm:$0xff] %vm2226_vm2, %v2214_v5  ;;  %v2215_v36 = vsel %vm2193_vm1, %v2140_v56, %v4076_v3 }
 0x35f   : > { %2248 = vst.msk [vmem:[%s3879_s6 + $0xa8] sm:$0xff] %vm2226_vm2, %v2215_v36 }
 0x373   : > { %v2154_v15 = vpop.permute.xlu0 %2153 }
 0x374   : > { %v2222_v31 = vsel %vm2193_vm1, %v2154_v15, %v3780_v28 }
 0x375   : > { %2255 = vst.msk [vmem:[%s3879_s6 + $0xe0] sm:$0xff] %vm2226_vm2, %v2222_v31 }
 0x377   : > { %v2142_v63 = vpop.permute.xlu0 %2141 }
 0x378   : > { %v2156_v60 = vpop.permute.xlu1 %2155  ;;  %v2216_v18 = vsel %vm2193_vm1, %v2142_v63, %v3792_v23 }
 0x379   : > { %v2223_v45 = vsel %vm2193_vm1, %v2156_v60, %v3794_v39  ;;  %2249 = vst.msk [vmem:[%s3879_s6 + $0xb0] sm:$0xff] %vm2226_vm2, %v2216_v18 }
 0x37a   : > { %2256 = vst.msk [vmem:[%s3879_s6 + $0xe8] sm:$0xff] %vm2226_vm2, %v2223_v45 }
 0x37b   : > { %v2158_v61 = vpop.permute.xlu0 %2157 }
 0x37c   : > { %v2144_v57 = vpop.permute.xlu1 %2143  ;;  %v2224_v28 = vsel %vm2193_vm1, %v2158_v61, %v3778_v25 }
 0x37d   : > { %v2217_v24 = vsel %vm2193_vm1, %v2144_v57, %v3801_v10  ;;  %2257 = vst.msk [vmem:[%s3879_s6 + $0xf0] sm:$0xff] %vm2226_vm2, %v2224_v28 }
 0x37e   : > { %2250 = vst.msk [vmem:[%s3879_s6 + $0xb8] sm:$0xff] %vm2226_vm2, %v2217_v24 }
 0x380   : > { %v2160_v23 = vpop.permute.xlu1 %2159 }
 0x381   : > { %v2225_v39 = vsel %vm2193_vm1, %v2160_v23, %v3789_v55 }
 0x382   : > { %2258 = vst.msk [vmem:[%s3879_s6 + $0xf8] sm:$0xff] %vm2226_vm2, %v2225_v39 }
 0x383 PF: > { %s14_s15 = sadd.s32 1, %s2944_s15  }
 0x384   : > { %p11_p4 = scmp.ge.s32.totalorder %s14_s15, 4  }
 0x386   :  { %13 = sbr.rel (!%p11_p4) target bundleno = 1 (0x1), region = 69 }

</bundles_post_ra>
